<compile_context>
chip_gen: v5e
topology: v5e:2x2
jax: 0.10.0
libtpu: 0.0.40
codegen_flags: <defaults>
</compile_context>

<pallas_src>
import functools

import jax
import jax.numpy as jnp
import numpy as np
from jax.experimental import pallas as pl
from jax.experimental.pallas import tpu as pltpu

BN_EPS = 1e-5
NUM_CLASSES = 10  # module receives num_classes as a sequence and uses num_classes[0]
LANE = 128


def _make_divisible(v, divisor, min_value=None):
    if min_value is None:
        min_value = divisor
    new_v = max(min_value, int(v + divisor / 2) // divisor * divisor)
    if new_v < 0.9 * v:
        new_v += divisor
    return new_v


def _round_up(x, m):
    return (x + m - 1) // m * m


# ----------------------------- Pallas kernel ------------------------------- #
# Fused:  conv1 (im2col patches @ scale-folded weights) + bias + ReLU6
#       -> 1x1 conv (matmul, scale-folded weights) + bias + ReLU6
#       -> masked running sum over length on the MXU (global average pool)
#       -> classifier matmul + bias + log_softmax   (on the last length tile)
def _mobilenet_kernel(patches_ref, w1_ref, b1_ref, w2_ref, b2_ref,
                      wc_ref, bc_ref, out_ref, acc_ref, *, valid_len):
    l = pl.program_id(1)
    tile_l = patches_ref.shape[1]

    @pl.when(l == 0)
    def _():
        acc_ref[...] = jnp.zeros_like(acc_ref)

    p = patches_ref[0]                                                  # (tL, 3) bf16
    h1 = jnp.dot(p, w1_ref[...], preferred_element_type=jnp.float32)    # (tL, C1)
    h1 = jnp.clip(h1 + b1_ref[...], 0.0, 6.0)                           # ReLU6
    h2 = jnp.dot(h1.astype(jnp.bfloat16), w2_ref[...],
                 preferred_element_type=jnp.float32)                    # (tL, C2)
    h2 = jnp.clip(h2 + b2_ref[...], 0.0, 6.0)                           # ReLU6

    # Masked global-average-pool partial sum, fused into one MXU matvec:
    # rows past the valid length (zero-padded in the wrapper) get mask 0.
    rem = valid_len - l * tile_l                                        # traced scalar
    lane_pos = jax.lax.broadcasted_iota(jnp.int32, (1, tile_l), 1)
    mask_row = (lane_pos < rem).astype(jnp.float32)                     # (1, tL)
    acc_ref[...] += jnp.dot(mask_row, h2,
                            preferred_element_type=jnp.float32)         # (1, C2)

    @pl.when(l == pl.num_programs(1) - 1)
    def _():
        mean = acc_ref[...] * (1.0 / valid_len)                         # (1, C2)
        logits = jnp.dot(mean, wc_ref[...],
                         preferred_element_type=jnp.float32) + bc_ref[...]
        # Padded classifier lanes carry bias -1e30: exp underflows to 0, no NaN.
        m = jnp.max(logits, axis=-1, keepdims=True)
        z = logits - m
        lse = jnp.log(jnp.sum(jnp.exp(z), axis=-1, keepdims=True))
        out_ref[0] = (z - lse).astype(out_ref.dtype)                    # log_softmax


def features_head_pallas(patches, w1, b1, w2, b2, wc, bc, valid_len, tile_l):
    B, L1p, K = patches.shape
    C1 = w1.shape[1]
    C2 = w2.shape[1]
    NCp = wc.shape[1]
    nL = L1p // tile_l
    assert nL * tile_l == L1p

    # Scoped VMEM: the (tile_l, C2) f32 intermediate dominates; leave room for
    # a couple of live copies plus the pipeline buffers. Capped for v7x (64 MiB).
    vmem_limit = int(min(48 << 20, max(16 << 20, 3 * tile_l * C2 * 4 + (6 << 20))))

    kernel = functools.partial(_mobilenet_kernel, valid_len=valid_len)
    out = pl.pallas_call(
        kernel,
        out_shape=jax.ShapeDtypeStruct((B, 1, NCp), jnp.float32),
        grid_spec=pltpu.PrefetchScalarGridSpec(
            num_scalar_prefetch=0,
            grid=(B, nL),
            in_specs=[
                pl.BlockSpec((1, tile_l, K), lambda b, l: (b, l, 0)),
                pl.BlockSpec((K, C1), lambda b, l: (0, 0)),
                pl.BlockSpec((1, C1), lambda b, l: (0, 0)),
                pl.BlockSpec((C1, C2), lambda b, l: (0, 0)),
                pl.BlockSpec((1, C2), lambda b, l: (0, 0)),
                pl.BlockSpec((C2, NCp), lambda b, l: (0, 0)),
                pl.BlockSpec((1, NCp), lambda b, l: (0, 0)),
            ],
            out_specs=pl.BlockSpec((1, 1, NCp), lambda b, l: (b, 0, 0)),
            scratch_shapes=[pltpu.VMEM((1, C2), jnp.float32)],
        ),
        compiler_params=pltpu.CompilerParams(
            dimension_semantics=("parallel", "arbitrary"),
            vmem_limit_bytes=vmem_limit),
    )(patches, w1, b1, w2, b2, wc, bc)
    return out[:, 0, :]


# ------------------------------ glue / params ------------------------------ #
def init_params(key):
    input_channel = _make_divisible(32 * 1.0, 8)                 # 32
    last_channel = _make_divisible(1280 * max(1.0, 1.0), 8)      # 1280
    k1, k2, k3 = jax.random.split(key, 3)

    # Conv1d weights: kaiming_normal_(mode='fan_out') -> std = sqrt(2 / (out_c * k))
    w_conv1 = jax.random.normal(k1, (input_channel, 1, 3), jnp.float32) \
        * np.sqrt(2.0 / (input_channel * 3))
    w_conv2 = jax.random.normal(k2, (last_channel, input_channel, 1), jnp.float32) \
        * np.sqrt(2.0 / (last_channel * 1))

    def bn_scale_bias(c):
        gamma = jnp.ones((c,), jnp.float32)
        beta = jnp.zeros((c,), jnp.float32)
        rmean = jnp.zeros((c,), jnp.float32)
        rvar = jnp.ones((c,), jnp.float32)
        s = gamma / jnp.sqrt(rvar + BN_EPS)
        b = beta - rmean * s
        return s.reshape(1, c), b.reshape(1, c)

    s1, b1 = bn_scale_bias(input_channel)
    s2, b2 = bn_scale_bias(last_channel)

    # Linear(last_channel, NUM_CLASSES): normal(0, 0.01), zero bias
    w_fc = jax.random.normal(k3, (NUM_CLASSES, last_channel), jnp.float32) * 0.01
    b_fc = jnp.zeros((NUM_CLASSES,), jnp.float32)
    return dict(w_conv1=w_conv1, s1=s1, b1=b1,
                w_conv2=w_conv2, s2=s2, b2=b2,
                w_fc=w_fc, b_fc=b_fc)


def _preprocess_2d(x):
    # self.normalize = BatchNorm1d(6420)  (inference, init stats => pure scaling)
    x = x * (1.0 / np.sqrt(1.0 + BN_EPS))
    x = x[:, None, :]
    # self.maxpool1d = MaxPool1d(3, stride=2)
    L = x.shape[-1]
    Lp = (L - 3) // 2 + 1
    x = jnp.max(jnp.stack([x[:, :, k:k + 2 * Lp:2] for k in range(3)], axis=-1),
                axis=-1)
    return x


def mobilenet_v1_forward(x, params, *, max_tile_l=2048):
    if x.ndim == 2:
        x = _preprocess_2d(x)
    B, Cin, L = x.shape
    assert Cin == 1

    # im2col for Conv1d(1, C1, kernel=3, stride=2, padding=1)
    xp = jnp.pad(x[:, 0, :], ((0, 0), (1, 1)))
    L1 = (L + 2 - 3) // 2 + 1
    patches = jnp.stack([xp[:, k:k + 2 * L1:2] for k in range(3)], axis=-1)  # (B, L1, 3)

    # Length tiling: multiple of 128 (MXU/VPU-friendly), large enough that
    # realistic inputs (L1 up to 2048) run in a single grid step per batch;
    # L1 is zero-padded to a tile multiple and padded rows are excluded from
    # the mean via the in-kernel iota mask folded into the MXU matvec.
    tile_l = min(max_tile_l, _round_up(L1, LANE))
    L1p = _round_up(L1, tile_l)
    patches = jnp.pad(patches, ((0, 0), (0, L1p - L1), (0, 0))).astype(jnp.bfloat16)

    # Fold BN scales into the conv weights; feed the MXU in bf16, accumulate f32.
    w1 = (jnp.transpose(params["w_conv1"][:, 0, :]) * params["s1"]).astype(jnp.bfloat16)
    w2 = (jnp.transpose(params["w_conv2"][:, :, 0]) * params["s2"]).astype(jnp.bfloat16)
    b1 = params["b1"]
    b2 = params["b2"]

    # Lane-dense classifier: pad to 128 output lanes; padded bias = -1e30 so the
    # padded logits vanish inside the in-kernel log_softmax. Classifier weights
    # stay f32 (once-per-batch matvec; avoids precision drift near tolerance).
    NC = params["w_fc"].shape[0]
    NCp = _round_up(NC, LANE)
    wc = jnp.zeros((params["w_fc"].shape[1], NCp), jnp.float32)
    wc = wc.at[:, :NC].set(jnp.transpose(params["w_fc"]))
    bc = jnp.full((1, NCp), -1e30, jnp.float32)
    bc = bc.at[0, :NC].set(params["b_fc"])

    out = features_head_pallas(patches, w1, b1, w2, b2, wc, bc, L1, tile_l)
    return out[:, :NC]


# ------------------------------- reference --------------------------------- #
def reference_forward(x, params):
    if x.ndim == 2:
        x = _preprocess_2d(x)
    y = jax.lax.conv_general_dilated(
        x, params["w_conv1"], window_strides=(2,), padding=[(1, 1)],
        dimension_numbers=("NCH", "OIH", "NCH"))
    y = y * params["s1"][0][None, :, None] + params["b1"][0][None, :, None]
    y = jnp.clip(y, 0.0, 6.0)
    y = jax.lax.conv_general_dilated(
        y, params["w_conv2"], window_strides=(1,), padding=[(0, 0)],
        dimension_numbers=("NCH", "OIH", "NCH"))
    y = y * params["s2"][0][None, :, None] + params["b2"][0][None, :, None]
    y = jnp.clip(y, 0.0, 6.0)
    y = jnp.mean(y, axis=2)
    logits = y @ params["w_fc"].T + params["b_fc"]
    return jax.nn.log_softmax(logits, axis=1)


if __name__ == "__main__":
    key = jax.random.PRNGKey(0)
    pkey, xkey = jax.random.split(key)
    params = init_params(pkey)

    # Small 3-D input (PyTorch NCL): batch=2, channels=1, length=64
    x = jax.random.normal(xkey, (2, 1, 64), jnp.float32)

    out = jax.jit(lambda v: mobilenet_v1_forward(v, params))(x)
    out = jax.block_until_ready(out)

    ref = reference_forward(x, params)
    assert out.shape == (2, NUM_CLASSES)
    np.testing.assert_allclose(np.asarray(out), np.asarray(ref),
                               atol=5e-3, rtol=5e-3)
    print("KERNEL_OK")
</pallas_src>

<mosaic_0001>
module attributes {stable_mosaic.version = 11 : i64} {
  func.func @_mobilenet_kernel(%arg0: i32, %arg1: i32, %arg2: memref<1x128x3xbf16, #tpu.memory_space<vmem>>, %arg3: memref<3x32xbf16, #tpu.memory_space<vmem>>, %arg4: memref<1x32xf32, #tpu.memory_space<vmem>>, %arg5: memref<32x1280xbf16, #tpu.memory_space<vmem>>, %arg6: memref<1x1280xf32, #tpu.memory_space<vmem>>, %arg7: memref<1280x128xf32, #tpu.memory_space<vmem>>, %arg8: memref<1x128xf32, #tpu.memory_space<vmem>>, %arg9: memref<1x1x128xf32, #tpu.memory_space<vmem>>, %arg10: memref<1x1280xf32, #tpu.memory_space<vmem>>) attributes {dimension_semantics = [#tpu.dimension_semantics<parallel>, #tpu.dimension_semantics<arbitrary>], iteration_bounds = array<i64: 2, 1>, scalar_prefetch = 0 : i64, scratch_operands = 1 : i64, tpu.core_type = #tpu.core_type<tc>, window_params = [{transform_indices = @transform_0, window_bounds = array<i64: 1, 128, 3>}, {pipeline_mode = #tpu.pipeline_mode<synchronous>, transform_indices = @transform_1, window_bounds = array<i64: 3, 32>}, {pipeline_mode = #tpu.pipeline_mode<synchronous>, transform_indices = @transform_2, window_bounds = array<i64: 1, 32>}, {pipeline_mode = #tpu.pipeline_mode<synchronous>, transform_indices = @transform_3, window_bounds = array<i64: 32, 1280>}, {pipeline_mode = #tpu.pipeline_mode<synchronous>, transform_indices = @transform_4, window_bounds = array<i64: 1, 1280>}, {pipeline_mode = #tpu.pipeline_mode<synchronous>, transform_indices = @transform_5, window_bounds = array<i64: 1280, 128>}, {pipeline_mode = #tpu.pipeline_mode<synchronous>, transform_indices = @transform_6, window_bounds = array<i64: 1, 128>}, {transform_indices = @transform_7, window_bounds = array<i64: 1, 1, 128>}]} {
    %c0_i32 = arith.constant 0 : i32
    %0 = arith.cmpi eq, %arg1, %c0_i32 : i32
    %1 = arith.extui %0 : i1 to i32
    %c0_i32_0 = arith.constant 0 : i32
    %2 = arith.cmpi ne, %1, %c0_i32_0 : i32
    scf.if %2 {
      %cst_23 = arith.constant 0.000000e+00 : f32
      %38 = vector.broadcast %cst_23 : f32 to vector<1x1280xf32>
      %c0_24 = arith.constant 0 : index
      %c0_25 = arith.constant 0 : index
      %39 = vector.load %arg10[%c0_24, %c0_25] : memref<1x1280xf32, #tpu.memory_space<vmem>>, vector<1x1280xf32>
      tpu.vector_store %arg10[%c0_24, %c0_25], %38 {strides = array<i32>} : memref<1x1280xf32, #tpu.memory_space<vmem>>, vector<1x1280xf32>,
    } else {
    }
    %c0 = arith.constant 0 : index
    %c0_1 = arith.constant 0 : index
    %c0_2 = arith.constant 0 : index
    %3 = vector.load %arg2[%c0, %c0_1, %c0_2] : memref<1x128x3xbf16, #tpu.memory_space<vmem>>, vector<1x128x3xbf16>
    %4 = vector.shape_cast %3 : vector<1x128x3xbf16> to vector<128x3xbf16>
    %c0_3 = arith.constant 0 : index
    %c0_4 = arith.constant 0 : index
    %5 = vector.load %arg3[%c0_3, %c0_4] : memref<3x32xbf16, #tpu.memory_space<vmem>>, vector<3x32xbf16>
    %cst = arith.constant dense<0.000000e+00> : vector<128x32xf32>
    %6 = tpu.matmul %4, %5, %cst {dimension_numbers = #tpu.dot_dimension_numbers<[1], [0], [0], [1], [0, 0, 1, 1], [], []>} : vector<128x3xbf16>, vector<3x32xbf16>, vector<128x32xf32> -> vector<128x32xf32>
    %c0_5 = arith.constant 0 : index
    %c0_6 = arith.constant 0 : index
    %7 = vector.load %arg4[%c0_5, %c0_6] : memref<1x32xf32, #tpu.memory_space<vmem>>, vector<1x32xf32>
    %8 = vector.broadcast %7 : vector<1x32xf32> to vector<128x32xf32>
    %9 = arith.addf %6, %8 : vector<128x32xf32>
    %cst_7 = arith.constant 0.000000e+00 : f32
    %cst_8 = arith.constant 6.000000e+00 : f32
    %10 = vector.broadcast %cst_7 : f32 to vector<128x32xf32>
    %11 = arith.maximumf %10, %9 : vector<128x32xf32>
    %12 = vector.broadcast %cst_8 : f32 to vector<128x32xf32>
    %13 = arith.minimumf %12, %11 : vector<128x32xf32>
    %14 = arith.truncf %13 : vector<128x32xf32> to vector<128x32xbf16>
    %c0_9 = arith.constant 0 : index
    %c0_10 = arith.constant 0 : index
    %15 = vector.load %arg5[%c0_9, %c0_10] : memref<32x1280xbf16, #tpu.memory_space<vmem>>, vector<32x1280xbf16>
    %cst_11 = arith.constant dense<0.000000e+00> : vector<128x1280xf32>
    %16 = tpu.matmul %14, %15, %cst_11 {dimension_numbers = #tpu.dot_dimension_numbers<[1], [0], [0], [1], [0, 0, 1, 1], [], []>} : vector<128x32xbf16>, vector<32x1280xbf16>, vector<128x1280xf32> -> vector<128x1280xf32>
    %c0_12 = arith.constant 0 : index
    %c0_13 = arith.constant 0 : index
    %17 = vector.load %arg6[%c0_12, %c0_13] : memref<1x1280xf32, #tpu.memory_space<vmem>>, vector<1x1280xf32>
    %18 = vector.broadcast %17 : vector<1x1280xf32> to vector<128x1280xf32>
    %19 = arith.addf %16, %18 : vector<128x1280xf32>
    %cst_14 = arith.constant 0.000000e+00 : f32
    %cst_15 = arith.constant 6.000000e+00 : f32
    %20 = vector.broadcast %cst_14 : f32 to vector<128x1280xf32>
    %21 = arith.maximumf %20, %19 : vector<128x1280xf32>
    %22 = vector.broadcast %cst_15 : f32 to vector<128x1280xf32>
    %23 = arith.minimumf %22, %21 : vector<128x1280xf32>
    %c128_i32 = arith.constant 128 : i32
    %24 = arith.muli %arg1, %c128_i32 : i32
    %c32_i32 = arith.constant 32 : i32
    %25 = arith.subi %c32_i32, %24 : i32
    %26 = tpu.iota {dimensions = array<i32: 1>} : vector<1x128xi32>
    %27 = vector.broadcast %25 : i32 to vector<1x128xi32>
    %28 = arith.cmpi slt, %26, %27 : vector<1x128xi32>
    %29 = arith.extui %28 : vector<1x128xi1> to vector<1x128xi32>
    %30 = arith.sitofp %29 : vector<1x128xi32> to vector<1x128xf32>
    %c0_16 = arith.constant 0 : index
    %c0_17 = arith.constant 0 : index
    %31 = vector.load %arg10[%c0_16, %c0_17] : memref<1x1280xf32, #tpu.memory_space<vmem>>, vector<1x1280xf32>
    %cst_18 = arith.constant dense<0.000000e+00> : vector<1x1280xf32>
    %32 = tpu.matmul %30, %23, %cst_18 {dimension_numbers = #tpu.dot_dimension_numbers<[1], [0], [0], [1], [0, 0, 1, 1], [], []>} : vector<1x128xf32>, vector<128x1280xf32>, vector<1x1280xf32> -> vector<1x1280xf32>
    %33 = arith.addf %31, %32 : vector<1x1280xf32>
    %c0_19 = arith.constant 0 : index
    %c0_20 = arith.constant 0 : index
    %34 = vector.load %arg10[%c0_19, %c0_20] : memref<1x1280xf32, #tpu.memory_space<vmem>>, vector<1x1280xf32>
    tpu.vector_store %arg10[%c0_19, %c0_20], %33 {strides = array<i32>} : memref<1x1280xf32, #tpu.memory_space<vmem>>, vector<1x1280xf32>,
    %c0_i32_21 = arith.constant 0 : i32
    %35 = arith.cmpi eq, %arg1, %c0_i32_21 : i32
    %36 = arith.extui %35 : i1 to i32
    %c0_i32_22 = arith.constant 0 : i32
    %37 = arith.cmpi ne, %36, %c0_i32_22 : i32
    scf.if %37 {
      %c0_23 = arith.constant 0 : index
      %c0_24 = arith.constant 0 : index
      %38 = vector.load %arg10[%c0_23, %c0_24] : memref<1x1280xf32, #tpu.memory_space<vmem>>, vector<1x1280xf32>
      %cst_25 = arith.constant 3.125000e-02 : f32
      %39 = vector.broadcast %cst_25 : f32 to vector<1x1280xf32>
      %40 = arith.mulf %38, %39 : vector<1x1280xf32>
      %c0_26 = arith.constant 0 : index
      %c0_27 = arith.constant 0 : index
      %41 = vector.load %arg7[%c0_26, %c0_27] : memref<1280x128xf32, #tpu.memory_space<vmem>>, vector<1280x128xf32>
      %cst_28 = arith.constant dense<0.000000e+00> : vector<1x128xf32>
      %42 = tpu.matmul %40, %41, %cst_28 {dimension_numbers = #tpu.dot_dimension_numbers<[1], [0], [0], [1], [0, 0, 1, 1], [], []>} : vector<1x1280xf32>, vector<1280x128xf32>, vector<1x128xf32> -> vector<1x128xf32>
      %c0_29 = arith.constant 0 : index
      %c0_30 = arith.constant 0 : index
      %43 = vector.load %arg8[%c0_29, %c0_30] : memref<1x128xf32, #tpu.memory_space<vmem>>, vector<1x128xf32>
      %44 = arith.addf %42, %43 : vector<1x128xf32>
      %cst_31 = arith.constant dense<0xFF800000> : vector<1xf32>
      %45 = vector.multi_reduction <maximumf>, %44, %cst_31 [1] : vector<1x128xf32> to vector<1xf32>
      %46 = vector.shape_cast %45 : vector<1xf32> to vector<1x1xf32>
      %47 = vector.broadcast %46 : vector<1x1xf32> to vector<1x128xf32>
      %48 = arith.subf %44, %47 : vector<1x128xf32>
      %49 = math.exp %48 : vector<1x128xf32>
      %cst_32 = arith.constant dense<0.000000e+00> : vector<1xf32>
      %50 = vector.multi_reduction <add>, %49, %cst_32 [1] : vector<1x128xf32> to vector<1xf32>
      %51 = vector.shape_cast %50 : vector<1xf32> to vector<1x1xf32>
      %52 = math.log %51 : vector<1x1xf32>
      %53 = vector.broadcast %52 : vector<1x1xf32> to vector<1x128xf32>
      %54 = arith.subf %48, %53 : vector<1x128xf32>
      %c0_33 = arith.constant 0 : index
      %c0_34 = arith.constant 0 : index
      %c0_35 = arith.constant 0 : index
      %55 = vector.load %arg9[%c0_33, %c0_34, %c0_35] : memref<1x1x128xf32, #tpu.memory_space<vmem>>, vector<1x1x128xf32>
      %56 = vector.shape_cast %55 : vector<1x1x128xf32> to vector<1x128xf32>
      %57 = vector.shape_cast %54 : vector<1x128xf32> to vector<1x1x128xf32>
      tpu.vector_store %arg9[%c0_33, %c0_34, %c0_35], %57 {strides = array<i32>} : memref<1x1x128xf32, #tpu.memory_space<vmem>>, vector<1x1x128xf32>,
    } else {
    }
    return
  }
  func.func @transform_0(%arg0: i32, %arg1: i32) -> (i32, i32, i32) {
    %c0_i32 = arith.constant 0 : i32
    %c0_i32_0 = arith.constant 0 : i32
    return %arg0, %arg1, %c0_i32 : i32, i32, i32
  }
  func.func @transform_1(%arg0: i32, %arg1: i32) -> (i32, i32) {
    %c0_i32 = arith.constant 0 : i32
    %c0_i32_0 = arith.constant 0 : i32
    %c0_i32_1 = arith.constant 0 : i32
    return %c0_i32, %c0_i32_0 : i32, i32
  }
  func.func @transform_2(%arg0: i32, %arg1: i32) -> (i32, i32) {
    %c0_i32 = arith.constant 0 : i32
    %c0_i32_0 = arith.constant 0 : i32
    %c0_i32_1 = arith.constant 0 : i32
    return %c0_i32, %c0_i32_0 : i32, i32
  }
  func.func @transform_3(%arg0: i32, %arg1: i32) -> (i32, i32) {
    %c0_i32 = arith.constant 0 : i32
    %c0_i32_0 = arith.constant 0 : i32
    %c0_i32_1 = arith.constant 0 : i32
    return %c0_i32, %c0_i32_0 : i32, i32
  }
  func.func @transform_4(%arg0: i32, %arg1: i32) -> (i32, i32) {
    %c0_i32 = arith.constant 0 : i32
    %c0_i32_0 = arith.constant 0 : i32
    %c0_i32_1 = arith.constant 0 : i32
    return %c0_i32, %c0_i32_0 : i32, i32
  }
  func.func @transform_5(%arg0: i32, %arg1: i32) -> (i32, i32) {
    %c0_i32 = arith.constant 0 : i32
    %c0_i32_0 = arith.constant 0 : i32
    %c0_i32_1 = arith.constant 0 : i32
    return %c0_i32, %c0_i32_0 : i32, i32
  }
  func.func @transform_6(%arg0: i32, %arg1: i32) -> (i32, i32) {
    %c0_i32 = arith.constant 0 : i32
    %c0_i32_0 = arith.constant 0 : i32
    %c0_i32_1 = arith.constant 0 : i32
    return %c0_i32, %c0_i32_0 : i32, i32
  }
  func.func @transform_7(%arg0: i32, %arg1: i32) -> (i32, i32, i32) {
    %c0_i32 = arith.constant 0 : i32
    %c0_i32_0 = arith.constant 0 : i32
    %c0_i32_1 = arith.constant 0 : i32
    return %arg0, %c0_i32, %c0_i32_0 : i32, i32, i32
  }
}

</mosaic_0001>

<bundles_post_ra>
// kernel: _lambda_.1
= control target key start
LH: loop header
LB: loop body
LE: loop exit
PB: predicated region body
PF: predicated region fallthrough
CT: control target
= control target key end

     0   :  { %12 = vsyncpa [#allocation4], 0  ;;  %s4360_s0 = inlined_call_operand.vmem [shape: bf16[2,128,3], index: 0, kind: input, shape index: {}]   ;;  %s4361_s1 = inlined_call_operand.vmem [shape: bf16[3,32], index: 1, kind: input, shape index: {}]   ;;  %s4362_s2 = inlined_call_operand.vmem [shape: f32[1,32], index: 2, kind: input, shape index: {}]   ;;  %s4363_s3 = inlined_call_operand.vmem [shape: bf16[32,1280], index: 3, kind: input, shape index: {}]   ;;  %s4364_s4 = inlined_call_operand.vmem [shape: f32[1,1280], index: 4, kind: input, shape index: {}]   ;;  %s4365_s5 = inlined_call_operand.vmem [shape: f32[1280,128], index: 5, kind: input, shape index: {}]   ;;  %s4366_s6 = inlined_call_operand.vmem [shape: f32[1,128], index: 6, kind: input, shape index: {}]   ;;  %s4367_s7 = inlined_call_operand.hbm [shape: f32[2,1,128], index: 7, kind: output, shape index: {}]  }
   0x1   :  { %14 = vsyncpa [#allocation4 + $0x1], 0  ;;  %s2647_s24 = smov 0   ;;  %s2649_s25 = smov 0  }
   0x2   :  { %s2651_s26 = smov 0   ;;  %s2653_s27 = smov 0  }
   0x3   :  { %s2655_s28 = smov 0   ;;  %s2657_s29 = smov 0  }
   0x4 LB: > { %s2212_s30 = sadd.s32 4294967295, %s2602_s29   ;;  %s2213_s8 = sadd.s32 4294967294, %s2602_s29   ;;  %s2602_s29 = sphi %s2657_s29, %s20_s29   ;;  %s2598_s28 = sphi %s2655_s28, %s4486_s28   ;;  %s2594_s27 = sphi %s2653_s27, %s4485_s27   ;;  %s2590_s26 = sphi %s2651_s26, %s4484_s26   ;;  %s2586_s25 = sphi %s2649_s25, %s4483_s25   ;;  %s2582_s24 = sphi %s2647_s24, %s4482_s24  }
   0x5   : > { %s32_s9 = sadd.s32 1, %s2598_s28  ;;  %s193_s10 = sadd.s32 1, %s2590_s26 }
   0x6   : > { %p34_p0 = scmp.ge.s32.totalorder %s32_s9, 2  ;;  %p203_p1 = scmp.ne.s32.totalorder %s2590_s26, %s2586_s25 }
   0x7   : > { %p204_p2 = scmp.eq.s32.totalorder %s2212_s30, 1  ;;  %p209_p3 = scmp.ne.s32.totalorder %s2586_s25, %s2582_s24 }
   0x8   : > { %s4488_s9 = smov (%p34_p0, %s32_s9), 0  ;;  %p210_p5 = scmp.eq.s32.totalorder %s2213_s8, 1 }
   0x9   : > { %p2687_p4 = por %p204_p2, %p203_p1  ;;  %s190_s12 = ssub.s32 %s2598_s28, %s4488_s9 }
   0xa   : > { %p2216_p6 = scmp.ge.s32.totalorder %s2602_s29, 1  ;;  %p191_p7 = scmp.eq.s32.totalorder %s190_s12, 0 }
   0xb   : > { %p2694_p8 = por %p210_p5, %p209_p3  ;;  %p259_p9 = scmp.lt.s32.totalorder %s2602_s29, 3 }
   0xc   : > { %s2700_s14 = scalar_select %p191_p7, %s2590_s26, %s193_s10  }
   0xd   : > { %p260_p10 = pnand %p2216_p6, %p259_p9 }
   0xf   : > { %263 = sbr.rel (%p260_p10) target bundleno = 1253 (0x4e5), region = 48 }
  0x14   : > { %v331_v0 = vld [vmem:[%s4361_s1] sm:$0x3]  ;;  %vm401_vm0 = vcmask 1040384   ;;  %vm402_vm1 = vcmask 1041408   ;;  %p295_p11 = scmp.lt.s32.totalorder %s2594_s27, 1  ;;  %v2604_v1 = vmov 65535   ;;  %s2139_s19 = scalar_lea.hbm %s4367_s7, %s2594_s27 }
  0x15   : > { %v403_v2 = vsel %vm401_vm0, 4294967295, %v2604_v1  ;;  %vm376_vm2 = vcmask 23552   ;;  %v2452_v11 = vld [vmem:[%s4363_s3 + $0x5c] sm:$0xf]  ;;  %v2311_v12 = vld [vmem:[%s4363_s3 + $0x80] sm:$0xf0] }
  0x16   : > { %v404_v3 = vsel %vm402_vm1, %v403_v2, 0  ;;  %s296_s17 = scalar_select %p295_p11, %s2594_s27, 1  ;;  %v2314_v13 = vor.u32 %v2452_v11, %v2311_v12  ;;  %v2301_v15 = vld [vmem:[%s4363_s3 + $0x50] sm:$0xf]  ;;  %v2456_v16 = vld [vmem:[%s4363_s3 + $0x74] sm:$0xf0] }
  0x17   : > { %v406_v4 = vand.u32 %v404_v3, %v331_v0  ;;  %v2451_v17 = vld [vmem:[%s4363_s3 + $0x54] sm:$0xf]  ;;  %v2302_v18 = vor.u32 %v2456_v16, %v2301_v15  ;;  %v2303_v19 = vld [vmem:[%s4363_s3 + $0x78] sm:$0xf0]  ;;  %v2309_v20 = vld [vmem:[%s4363_s3 + $0x58] sm:$0xf] }
  0x18   : > { %s2432_s18 = sshll.u32 %s296_s17, 6  ;;  %v2457_v21 = vld [vmem:[%s4363_s3 + $0x7c] sm:$0xf0]  ;;  %v2306_v22 = vor.u32 %v2451_v17, %v2303_v19  ;;  %v2446_v25 = vld [vmem:[%s4363_s3 + $0x24] sm:$0xf0]  ;;  %vm641_vm3 = vcmask 261120  }
  0x19   : > { %415 = vmatpush.bf16.msra.mxu0 %v406_v4  ;;  %s2712_s21 = scalar_lea.vmem %s4360_s0, %s2432_s18  ;;  %v2310_v23 = vor.u32 %v2457_v21, %v2309_v20  ;;  %672 = vmatpush.bf16.msra.mxu1 %v2302_v18  ;;  %v2261_v24 = vld [vmem:[%s4363_s3] sm:$0xf]  ;;  %v2441_v26 = vld [vmem:[%s4363_s3 + $0x4] sm:$0xf]  ;;  %v2263_v28 = vld [vmem:[%s4363_s3 + $0x28] sm:$0xf0] }
  0x1a   : > { %v2433_v5 = vld [vmem:[%s2712_s21] sm:$0xff]  ;;  %v2434_v6 = vld [vmem:[%s2712_s21 + $0x8] sm:$0xff]  ;;  %v2435_v7 = vld [vmem:[%s2712_s21 + $0x10] sm:$0xff]  ;;  %721 = vmatpush.bf16.msra.mxu2 %v2306_v22  ;;  %v2262_v27 = vor.u32 %v2446_v25, %v2261_v24  ;;  %v2266_v31 = vor.u32 %v2441_v26, %v2263_v28  ;;  %vm1705_vm5 = vcmask 1042434   ;;  %vm1708_vm6 = vcmask 1044484   ;;  %s292_s16 = sand.u32 1, %s2586_s25  }
  0x1b   : > { %v2436_v8 = vld [vmem:[%s2712_s21 + $0x18] sm:$0xff]  ;;  %v2437_v9 = vld [vmem:[%s2712_s21 + $0x20] sm:$0xff]  ;;  %v2438_v10 = vld [vmem:[%s2712_s21 + $0x28] sm:$0xff]  ;;  %770 = vmatpush.bf16.msra.mxu3 %v2310_v23  ;;  %vm1710_vm7 = vcmask 1046534   ;;  %vm1712_vm8 = vcmask 1045508   ;;  %vm1714_vm9 = vcmask 1043456  }
  0x1c   : > { %2251 = vmatmul.msk.bf16.vlgmr.msra.gmra.mxu0 %vm376_vm2, %v2433_v5  ;;  %v2439_v14 = vld [vmem:[%s2712_s21 + $0x30] sm:$0xff]  ;;  %v2269_v29 = vld [vmem:[%s4363_s3 + $0x8] sm:$0xf]  ;;  %v2442_v33 = vld [vmem:[%s4363_s3 + $0xc] sm:$0xf]  ;;  %s293_s20 = scalar_lea.vmem [#allocation3], %s292_s16 }
  0x1d   : > { %819 = vmatpush.bf16.msrb.mxu0 %v2314_v13  ;;  %v2447_v30 = vld [vmem:[%s4363_s3 + $0x2c] sm:$0xf0]  ;;  %v2271_v34 = vld [vmem:[%s4363_s3 + $0x30] sm:$0xf0]  ;;  %673 = vmatpush.bf16.msra.mxu1 %v2262_v27  ;;  %v2440_v36 = vld [vmem:[%s2712_s21 + $0x38] sm:$0xff]  ;;  %s2141_s22 = sshll.u32 %s293_s20, 4  ;;  %s2142_s22 = int_to_ptr.vmem [resolvable:$true] %s2141_s22 }
  0x1e   : > { %v2270_v32 = vor.u32 %v2447_v30, %v2269_v29  ;;  %v2274_v35 = vor.u32 %v2442_v33, %v2271_v34  ;;  %722 = vmatpush.bf16.msra.mxu2 %v2266_v31  ;;  %v2453_v37 = vld [vmem:[%s4363_s3 + $0x64] sm:$0xf]  ;;  %v2319_v38 = vld [vmem:[%s4363_s3 + $0x88] sm:$0xf0]  ;;  %v2787_v41 = vld [vmem:[%s4362_s2] ss:$0 sm:$0xff] }
  0x1f   : > { %v2322_v40 = vor.u32 %v2453_v37, %v2319_v38  ;;  %v2317_v43 = vld [vmem:[%s4363_s3 + $0x60] sm:$0xf]  ;;  %v2458_v44 = vld [vmem:[%s4363_s3 + $0x84] sm:$0xf0]  ;;  %v2443_v16 = vld [vmem:[%s4363_s3 + $0x14] sm:$0xf] }
  0x20   : > { %771 = vmatpush.bf16.msra.mxu3 %v2270_v32  ;;  %v2318_v45 = vor.u32 %v2458_v44, %v2317_v43  ;;  %v2279_v17 = vld [vmem:[%s4363_s3 + $0x38] sm:$0xf0]  ;;  %v2277_v21 = vld [vmem:[%s4363_s3 + $0x10] sm:$0xf]  ;;  %v2448_v22 = vld [vmem:[%s4363_s3 + $0x34] sm:$0xf0] }
  0x21   : > { %820 = vmatpush.bf16.msrb.mxu0 %v2274_v35  ;;  %v2282_v19 = vor.u32 %v2443_v16, %v2279_v17  ;;  %v2278_v23 = vor.u32 %v2448_v22, %v2277_v21  ;;  %v2325_v33 = vld [vmem:[%s4363_s3 + $0x68] sm:$0xf]  ;;  %v2459_v34 = vld [vmem:[%s4363_s3 + $0x8c] sm:$0xf0]  ;;  %v2454_v44 = vld [vmem:[%s4363_s3 + $0x6c] sm:$0xf] }
  0x22   : > { %917 = vmatpush.bf16.msrb.mxu2 %v2322_v40  ;;  %868 = vmatpush.bf16.msrb.mxu1 %v2318_v45  ;;  %v2326_v35 = vor.u32 %v2459_v34, %v2325_v33  ;;  %v2327_v45 = vld [vmem:[%s4363_s3 + $0x90] sm:$0xf0]  ;;  %s2143_s23 = sshll.u32 %s2139_s19, 4  ;;  %s2131_s21 = scalar_lea.sflag [#allocation4], %s292_s16  ;;  %s2144_s23 = int_to_ptr.hbm [resolvable:$true] %s2143_s23 }
  0x23   : > { %s2538_s30 = sshra.s32 %s2144_s23, 4  ;;  %s2544_s27 = scalar_lea.hbm %s4367_s7, 2  ;;  %s2539_s30 = int_to_ptr.hbm [resolvable:$true] %s2538_s30 }
  0x24   : > { %966 = vmatpush.bf16.msrb.mxu3 %v2326_v35  ;;  %s2540_s8 = scalar_lea.hbm %s2539_s30, 1  ;;  %p2545_p1 = scmp.lt.s32.totalorder %s2539_s30, %s4367_s7 }
  0x25   : > { %p2541_p12 = scmp.ne.s32.totalorder %s2539_s30, %s2540_s8  ;;  %p2546_p2 = scmp.lt.s32.totalorder %s2544_s27, %s2540_s8 }
  0x26   : > { %918 = vmatpush.bf16.msrb.mxu2 %v2282_v19  ;;  %869 = vmatpush.bf16.msrb.mxu1 %v2278_v23 }
  0x27   : > { %p2542_p13 = pnand %p2541_p12, %p2687_p4  ;;  %p2547_p3 = por %p2546_p2, %p2545_p1 }
  0x29   : > { %p2543_p0 = pneg %p2542_p13 }
  0x2b   : > { %p2548_p5 = pnand %p2547_p3, %p2543_p0 }
  0x2c   : > { %2252 = vmatmul.msk.bf16.gmra.mxu0 %vm376_vm2, %v2434_v6 }
  0x3c   : > { %2253 = vmatmul.msk.bf16.gmra.mxu0 %vm376_vm2, %v2435_v7 }
  0x4c   : > { %2254 = vmatmul.msk.bf16.gmra.mxu0 %vm376_vm2, %v2436_v8 }
  0x5c   : > { %2255 = vmatmul.msk.bf16.gmra.mxu0 %vm376_vm2, %v2437_v9 }
  0x6c   : > { %2256 = vmatmul.msk.bf16.gmra.mxu0 %vm376_vm2, %v2438_v10 }
  0x7c   : > { %2257 = vmatmul.msk.bf16.gmra.mxu0 %vm376_vm2, %v2439_v14 }
  0x8c   : > { %2258 = vmatmul.msk.bf16.gmra.mxu0 %vm376_vm2, %v2440_v36 }
  0x99   : > { %v417_v39 = vpop.f32.mrf.mxu0 }
  0x9a   : > { %v418_v42 = vadd.f32 %v2787_v41, %v417_v39 }
  0x9c   : > { %v457_v47 = vmax.f32 %v418_v42, 0.0 }
  0x9e   : > { %v473_v50 = vmin.f32 %v457_v47, 6.0  ;;  %v2330_v47 = vor.u32 %v2454_v44, %v2327_v45 }
  0xa0   : > { %1015 = vmatpush.bf16.msra.mxu0 %v2330_v47 }
  0xa1   : > { %v419_v46 = vpop.f32.mrf.mxu0 }
  0xa2   : > { %v420_v48 = vadd.f32 %v2787_v41, %v419_v46 }
  0xa4   : > { %v458_v49 = vmax.f32 %v420_v48, 0.0 }
  0xa6   : > { %v474_v51 = vmin.f32 %v458_v49, 6.0 }
  0xa8   : > { %v2797_v52 = vpack.c.bf16 %v474_v51, %v473_v50 }
  0xa9   : > { %v422_v53 = vpop.f32.mrf.mxu0 }
  0xaa   : > { %2339 = vmatmul.msk.bf16.vlgmr.msra.gmra.mxu1 %vm641_vm3, %v2797_v52  ;;  %2347 = vmatmul.msk.bf16.vlgmr.msra.gmra.mxu2 %vm641_vm3, %v2797_v52  ;;  %v423_v54 = vadd.f32 %v2787_v41, %v422_v53 }
  0xab   : > { %2355 = vmatmul.msk.bf16.vlgmr.msra.gmra.mxu3 %vm641_vm3, %v2797_v52  ;;  %2363 = vmatmul.msk.bf16.vlgmr.msrb.gmra.mxu0 %vm641_vm3, %v2797_v52 }
  0xac   : > { %v459_v56 = vmax.f32 %v423_v54, 0.0  ;;  %v2285_v54 = vld [vmem:[%s4363_s3 + $0x18] sm:$0xf] }
  0xae   : > { %v475_v59 = vmin.f32 %v459_v56, 6.0  ;;  %v2444_v56 = vld [vmem:[%s4363_s3 + $0x1c] sm:$0xf] }
  0xb1   : > { %v424_v55 = vpop.f32.mrf.mxu0 }
  0xb2   : > { %v425_v57 = vadd.f32 %v2787_v41, %v424_v55  ;;  %v2449_v55 = vld [vmem:[%s4363_s3 + $0x3c] sm:$0xf0] }
  0xb4   : > { %v460_v58 = vmax.f32 %v425_v57, 0.0 }
  0xb6   : > { %v476_v60 = vmin.f32 %v460_v58, 6.0 }
  0xb8   : > { %v2809_v61 = vpack.c.bf16 %v476_v60, %v475_v59  ;;  %v2286_v59 = vor.u32 %v2449_v55, %v2285_v54  ;;  %v2287_v60 = vld [vmem:[%s4363_s3 + $0x40] sm:$0xf0] }
  0xb9   : > { %v427_v62 = vpop.f32.mrf.mxu0 }
  0xba   : > { %2340 = vmatmul.msk.bf16.gmra.mxu1 %vm641_vm3, %v2809_v61  ;;  %2348 = vmatmul.msk.bf16.gmra.mxu2 %vm641_vm3, %v2809_v61  ;;  %v428_v63 = vadd.f32 %v2787_v41, %v427_v62  ;;  %v2290_v62 = vor.u32 %v2444_v56, %v2287_v60 }
  0xbb   : > { %2356 = vmatmul.msk.bf16.gmra.mxu3 %vm641_vm3, %v2809_v61  ;;  %2364 = vmatmul.msk.bf16.gmra.mxu0 %vm641_vm3, %v2809_v61 }
  0xbc   : > { %v461_v1 = vmax.f32 %v428_v63, 0.0  ;;  %967 = vmatpush.bf16.msrb.mxu3 %v2286_v59  ;;  %1016 = vmatpush.bf16.msra.mxu0 %v2290_v62 }
  0xbe   : > { %v477_v4 = vmin.f32 %v461_v1, 6.0 }
  0xc1   : > { %v429_v0 = vpop.f32.mrf.mxu0 }
  0xc2   : > { %v430_v2 = vadd.f32 %v2787_v41, %v429_v0 }
  0xc4   : > { %v462_v3 = vmax.f32 %v430_v2, 0.0 }
  0xc6   : > { %v478_v5 = vmin.f32 %v462_v3, 6.0 }
  0xc8   : > { %v2821_v6 = vpack.c.bf16 %v478_v5, %v477_v4 }
  0xc9   : > { %v432_v7 = vpop.f32.mrf.mxu0 }
  0xca   : > { %2341 = vmatmul.msk.bf16.gmra.mxu1 %vm641_vm3, %v2821_v6  ;;  %2349 = vmatmul.msk.bf16.gmra.mxu2 %vm641_vm3, %v2821_v6  ;;  %v433_v8 = vadd.f32 %v2787_v41, %v432_v7  ;;  %v2455_v7 = vld [vmem:[%s4363_s3 + $0x74] sm:$0xf] }
  0xcb   : > { %2357 = vmatmul.msk.bf16.gmra.mxu3 %vm641_vm3, %v2821_v6  ;;  %2365 = vmatmul.msk.bf16.gmra.mxu0 %vm641_vm3, %v2821_v6 }
  0xcc   : > { %v463_v10 = vmax.f32 %v433_v8, 0.0  ;;  %v2335_v8 = vld [vmem:[%s4363_s3 + $0x98] sm:$0xf0] }
  0xce   : > { %v479_v13 = vmin.f32 %v463_v10, 6.0 }
  0xd1   : > { %v434_v9 = vpop.f32.mrf.mxu0 }
  0xd2   : > { %v435_v11 = vadd.f32 %v2787_v41, %v434_v9 }
  0xd4   : > { %v464_v12 = vmax.f32 %v435_v11, 0.0  ;;  %v2338_v11 = vor.u32 %v2455_v7, %v2335_v8 }
  0xd6   : > { %v480_v14 = vmin.f32 %v464_v12, 6.0  ;;  %1113 = vmatpush.bf16.msra.mxu2 %v2338_v11 }
  0xd8   : > { %v2833_v15 = vpack.c.bf16 %v480_v14, %v479_v13  ;;  %v2460_v13 = vld [vmem:[%s4363_s3 + $0x94] sm:$0xf0] }
  0xd9   : > { %v437_v18 = vpop.f32.mrf.mxu0 }
  0xda   : > { %2342 = vmatmul.msk.bf16.gmra.mxu1 %vm641_vm3, %v2833_v15  ;;  %2350 = vmatmul.msk.bf16.gmra.mxu2 %vm641_vm3, %v2833_v15  ;;  %v438_v20 = vadd.f32 %v2787_v41, %v437_v18 }
  0xdb   : > { %2358 = vmatmul.msk.bf16.gmra.mxu3 %vm641_vm3, %v2833_v15  ;;  %2366 = vmatmul.msk.bf16.gmra.mxu0 %vm641_vm3, %v2833_v15 }
  0xdc   : > { %v465_v25 = vmax.f32 %v438_v20, 0.0 }
  0xde   : > { %v481_v28 = vmin.f32 %v465_v25, 6.0 }
  0xe1   : > { %v439_v24 = vpop.f32.mrf.mxu0 }
  0xe2   : > { %v440_v26 = vadd.f32 %v2787_v41, %v439_v24 }
  0xe4   : > { %v466_v27 = vmax.f32 %v440_v26, 0.0 }
  0xe6   : > { %v482_v29 = vmin.f32 %v466_v27, 6.0 }
  0xe8   : > { %v2857_v30 = vpack.c.bf16 %v482_v29, %v481_v28 }
  0xe9   : > { %v442_v31 = vpop.f32.mrf.mxu0 }
  0xea   : > { %2343 = vmatmul.msk.bf16.gmra.mxu1 %vm641_vm3, %v2857_v30  ;;  %2351 = vmatmul.msk.bf16.gmra.mxu2 %vm641_vm3, %v2857_v30  ;;  %v443_v32 = vadd.f32 %v2787_v41, %v442_v31 }
  0xeb   : > { %2359 = vmatmul.msk.bf16.gmra.mxu3 %vm641_vm3, %v2857_v30  ;;  %2367 = vmatmul.msk.bf16.gmra.mxu0 %vm641_vm3, %v2857_v30 }
  0xec   : > { %v467_v37 = vmax.f32 %v443_v32, 0.0 }
  0xee   : > { %v483_v40 = vmin.f32 %v467_v37, 6.0 }
  0xf1   : > { %v444_v36 = vpop.f32.mrf.mxu0 }
  0xf2   : > { %v445_v38 = vadd.f32 %v2787_v41, %v444_v36 }
  0xf4   : > { %v468_v39 = vmax.f32 %v445_v38, 0.0 }
  0xf6   : > { %v484_v42 = vmin.f32 %v468_v39, 6.0 }
  0xf8   : > { %v2875_v43 = vpack.c.bf16 %v484_v42, %v483_v40  ;;  %v2445_v40 = vld [vmem:[%s4363_s3 + $0x24] sm:$0xf]  ;;  %v2295_v42 = vld [vmem:[%s4363_s3 + $0x48] sm:$0xf0] }
  0xf9   : > { %v447_v46 = vpop.f32.mrf.mxu0  ;;  %v2298_v45 = vor.u32 %v2445_v40, %v2295_v42 }
  0xfa   : > { %4380 = vst [vmem:[#allocation6_spill] sm:$0xff] %v2875_v43  ;;  %2344 = vmatmul.msk.bf16.gmra.mxu1 %vm641_vm3, %v2875_v43  ;;  %2352 = vmatmul.msk.bf16.gmra.mxu2 %vm641_vm3, %v2875_v43  ;;  %v448_v48 = vadd.f32 %v2787_v41, %v447_v46 }
  0xfb   : > { %2360 = vmatmul.msk.bf16.gmra.mxu3 %vm641_vm3, %v2875_v43  ;;  %2368 = vmatmul.msk.bf16.gmra.mxu0 %vm641_vm3, %v2875_v43 }
  0xfc   : > { %v469_v50 = vmax.f32 %v448_v48, 0.0  ;;  %1114 = vmatpush.bf16.msra.mxu2 %v2298_v45 }
  0xfe   : > { %v485_v57 = vmin.f32 %v469_v50, 6.0  ;;  %v2450_v50 = vld [vmem:[%s4363_s3 + $0x44] sm:$0xf0] }
 0x101   : > { %v449_v49 = vpop.f32.mrf.mxu0 }
 0x102   : > { %v450_v51 = vadd.f32 %v2787_v41, %v449_v49  ;;  %v2293_v49 = vld [vmem:[%s4363_s3 + $0x20] sm:$0xf] }
 0x104   : > { %v470_v53 = vmax.f32 %v450_v51, 0.0 }
 0x106   : > { %v486_v58 = vmin.f32 %v470_v53, 6.0  ;;  %v2294_v53 = vor.u32 %v2450_v50, %v2293_v49 }
 0x108   : > { %v2905_v63 = vpack.c.bf16 %v486_v58, %v485_v57 }
 0x109   : > { %v452_v0 = vpop.f32.mrf.mxu0 }
 0x10a   : > { %4381 = vst [vmem:[#allocation7_spill] sm:$0xff] %v2905_v63  ;;  %2345 = vmatmul.msk.bf16.gmra.mxu1 %vm641_vm3, %v2905_v63  ;;  %2353 = vmatmul.msk.bf16.gmra.mxu2 %vm641_vm3, %v2905_v63  ;;  %v453_v1 = vadd.f32 %v2787_v41, %v452_v0 }
 0x10b   : > { %2361 = vmatmul.msk.bf16.gmra.mxu3 %vm641_vm3, %v2905_v63  ;;  %2369 = vmatmul.msk.bf16.gmra.mxu0 %vm641_vm3, %v2905_v63 }
 0x10c   : > { %v471_v3 = vmax.f32 %v453_v1, 0.0 }
 0x10e   : > { %v487_v9 = vmin.f32 %v471_v3, 6.0 }
 0x111   : > { %v454_v2 = vpop.f32.mrf.mxu0 }
 0x112   : > { %v455_v4 = vadd.f32 %v2787_v41, %v454_v2  ;;  %v2333_v41 = vld [vmem:[%s4363_s3 + $0x70] sm:$0xf] }
 0x113   : > { %v2334_v14 = vor.u32 %v2460_v13, %v2333_v41 }
 0x114   : > { %v472_v5 = vmax.f32 %v455_v4, 0.0 }
 0x115   : > { %1064 = vmatpush.bf16.msra.mxu1 %v2334_v14 }
 0x116   : > { %v488_v10 = vmin.f32 %v472_v5, 6.0 }
 0x118   : > { %v2923_v12 = vpack.c.bf16 %v488_v10, %v487_v9 }
 0x119   : > { %1065 = vmatpush.bf16.msra.mxu1 %v2294_v53 }
 0x11a   : > { %4382 = vst [vmem:[#allocation8_spill] sm:$0xff] %v2923_v12  ;;  %2346 = vmatmul.msk.bf16.gmra.mxu1 %vm641_vm3, %v2923_v12  ;;  %2354 = vmatmul.msk.bf16.gmra.mxu2 %vm641_vm3, %v2923_v12 }
 0x11b   : > { %2362 = vmatmul.msk.bf16.gmra.mxu3 %vm641_vm3, %v2923_v12  ;;  %2370 = vmatmul.msk.bf16.gmra.mxu0 %vm641_vm3, %v2923_v12 }
 0x127   : > { %v2939_v16 = vpop.f32.mrf.mxu1 }
 0x128   : > { %v2941_v17 = vpop.f32.mrf.mxu0 }
 0x129   : > { %4383 = vst [vmem:[#allocation9_spill] sm:$0xff] %v2941_v17 }
 0x12a   : > { %2371 = vmatmul.msk.bf16.vlgmr.msrb.gmra.mxu1 %vm641_vm3, %v2797_v52  ;;  %2379 = vmatmul.msk.bf16.vlgmr.msrb.gmra.mxu2 %vm641_vm3, %v2797_v52 }
 0x12b   : > { %2387 = vmatmul.msk.bf16.vlgmr.msrb.gmra.mxu3 %vm641_vm3, %v2797_v52  ;;  %2395 = vmatmul.msk.bf16.vlgmr.msra.gmra.mxu0 %vm641_vm3, %v2797_v52 }
 0x12d   : > { %v2951_v18 = vpop.f32.mrf.mxu2 }
 0x12e   : > { %v2953_v19 = vpop.f32.mrf.mxu3 }
 0x12f   : > { %4384 = vst [vmem:[#allocation10_spill] sm:$0xff] %v2953_v19  ;;  %v2955_v20 = vpop.f32.mrf.mxu1 }
 0x130   : > { %v2957_v21 = vpop.f32.mrf.mxu0 }
 0x131   : > { %4385 = vst [vmem:[#allocation11_spill] sm:$0xff] %v2957_v21 }
 0x135   : > { %v2959_v22 = vpop.f32.mrf.mxu2 }
 0x136   : > { %v2961_v23 = vpop.f32.mrf.mxu3 }
 0x137   : > { %4386 = vst [vmem:[#allocation12_spill] sm:$0xff] %v2961_v23  ;;  %v2963_v24 = vpop.f32.mrf.mxu1 }
 0x138   : > { %v2965_v25 = vpop.f32.mrf.mxu0 }
 0x139   : > { %4387 = vst [vmem:[#allocation13_spill] sm:$0xff] %v2965_v25 }
 0x13a   : > { %2372 = vmatmul.msk.bf16.gmra.mxu1 %vm641_vm3, %v2809_v61  ;;  %2380 = vmatmul.msk.bf16.gmra.mxu2 %vm641_vm3, %v2809_v61 }
 0x13b   : > { %2388 = vmatmul.msk.bf16.gmra.mxu3 %vm641_vm3, %v2809_v61  ;;  %2396 = vmatmul.msk.bf16.gmra.mxu0 %vm641_vm3, %v2809_v61 }
 0x13d   : > { %v2975_v26 = vpop.f32.mrf.mxu2 }
 0x13e   : > { %v2977_v27 = vpop.f32.mrf.mxu3 }
 0x13f   : > { %4388 = vst [vmem:[#allocation14_spill] sm:$0xff] %v2977_v27  ;;  %v2979_v28 = vpop.f32.mrf.mxu1 }
 0x140   : > { %v2981_v29 = vpop.f32.mrf.mxu0 }
 0x141   : > { %4389 = vst [vmem:[#allocation15_spill] sm:$0xff] %v2981_v29  ;;  %v3114_v29 = vld [vmem:[%s4364_s4] sm:$0xff] }
 0x145   : > { %v2983_v31 = vpop.f32.mrf.mxu2 }
 0x146   : > { %v2985_v32 = vpop.f32.mrf.mxu3 }
 0x147   : > { %v2987_v33 = vpop.f32.mrf.mxu1 }
 0x148   : > { %v2989_v34 = vpop.f32.mrf.mxu0 }
 0x149   : > { %4390 = vst [vmem:[#allocation16_spill] sm:$0xff] %v2989_v34 }
 0x14a   : > { %2373 = vmatmul.msk.bf16.gmra.mxu1 %vm641_vm3, %v2821_v6  ;;  %2381 = vmatmul.msk.bf16.gmra.mxu2 %vm641_vm3, %v2821_v6 }
 0x14b   : > { %2389 = vmatmul.msk.bf16.gmra.mxu3 %vm641_vm3, %v2821_v6  ;;  %2397 = vmatmul.msk.bf16.gmra.mxu0 %vm641_vm3, %v2821_v6 }
 0x14d   : > { %v2999_v35 = vpop.f32.mrf.mxu2 }
 0x14e   : > { %v3001_v36 = vpop.f32.mrf.mxu3 }
 0x14f   : > { %v3003_v37 = vpop.f32.mrf.mxu1 }
 0x150   : > { %v3005_v38 = vpop.f32.mrf.mxu0 }
 0x151   : > { %4391 = vst [vmem:[#allocation17_spill] sm:$0xff] %v3005_v38 }
 0x155   : > { %v3007_v39 = vpop.f32.mrf.mxu2 }
 0x156   : > { %v3015_v44 = vpop.f32.mrf.mxu3 }
 0x157   : > { %v3017_v46 = vpop.f32.mrf.mxu1 }
 0x158   : > { %v3019_v47 = vpop.f32.mrf.mxu0 }
 0x159   : > { %4392 = vst [vmem:[#allocation18_spill] sm:$0xff] %v3019_v47  ;;  %v3125_v47 = vperm.slane %v3114_v29, 0 }
 0x15a   : > { %2374 = vmatmul.msk.bf16.gmra.mxu1 %vm641_vm3, %v2833_v15  ;;  %2382 = vmatmul.msk.bf16.gmra.mxu2 %vm641_vm3, %v2833_v15 }
 0x15b   : > { %2390 = vmatmul.msk.bf16.gmra.mxu3 %vm641_vm3, %v2833_v15  ;;  %2398 = vmatmul.msk.bf16.gmra.mxu0 %vm641_vm3, %v2833_v15 }
 0x15d   : > { %v3029_v48 = vpop.f32.mrf.mxu2 }
 0x15e   : > { %v3037_v51 = vpop.f32.mrf.mxu3 }
 0x15f   : > { %v3039_v54 = vpop.f32.mrf.mxu1 }
 0x160   : > { %v3041_v55 = vpop.f32.mrf.mxu0 }
 0x161   : > { %4393 = vst [vmem:[#allocation19_spill] sm:$0xff] %v3041_v55 }
 0x165   : > { %v3043_v56 = vpop.f32.mrf.mxu2 }
 0x166   : > { %v3045_v57 = vpop.f32.mrf.mxu3 }
 0x167   : > { %v3047_v58 = vpop.f32.mrf.mxu1 }
 0x168   : > { %v3049_v59 = vpop.f32.mrf.mxu0 }
 0x169   : > { %4394 = vst [vmem:[#allocation20_spill] sm:$0xff] %v3049_v59 }
 0x16a   : > { %2375 = vmatmul.msk.bf16.gmra.mxu1 %vm641_vm3, %v2857_v30  ;;  %2383 = vmatmul.msk.bf16.gmra.mxu2 %vm641_vm3, %v2857_v30 }
 0x16b   : > { %2391 = vmatmul.msk.bf16.gmra.mxu3 %vm641_vm3, %v2857_v30  ;;  %2399 = vmatmul.msk.bf16.gmra.mxu0 %vm641_vm3, %v2857_v30 }
 0x16d   : > { %v3059_v60 = vpop.f32.mrf.mxu2 }
 0x16e   : > { %v3061_v62 = vpop.f32.mrf.mxu3 }
 0x16f   : > { %v697_v0 = vpop.f32.mrf.mxu1 }
 0x170   : > { %v3063_v1 = vpop.f32.mrf.mxu0 }
 0x171   : > { %4395 = vst [vmem:[#allocation21_spill] sm:$0xff] %v3063_v1 }
 0x175   : > { %v3065_v2 = vpop.f32.mrf.mxu2 }
 0x176   : > { %v3067_v3 = vpop.f32.mrf.mxu3 }
 0x177   : > { %v700_v4 = vpop.f32.mrf.mxu1 }
 0x178   : > { %v3069_v5 = vpop.f32.mrf.mxu0  ;;  %v701_v23 = vadd.f32 %v700_v4, %v3125_v47 }
 0x179   : > { %4396 = vst [vmem:[#allocation22_spill] sm:$0xff] %v3069_v5 }
 0x17a   : > { %2376 = vmatmul.msk.bf16.gmra.mxu1 %vm641_vm3, %v2875_v43  ;;  %2384 = vmatmul.msk.bf16.gmra.mxu2 %vm641_vm3, %v2875_v43  ;;  %v1256_v4 = vmax.f32 %v701_v23, 0.0 }
 0x17b   : > { %2392 = vmatmul.msk.bf16.gmra.mxu3 %vm641_vm3, %v2875_v43  ;;  %2400 = vmatmul.msk.bf16.gmra.mxu0 %vm641_vm3, %v2875_v43 }
 0x17d   : > { %v3079_v7 = vpop.f32.mrf.mxu2 }
 0x17e   : > { %v3081_v8 = vpop.f32.mrf.mxu3 }
 0x17f   : > { %v702_v9 = vpop.f32.mrf.mxu1 }
 0x180   : > { %v3083_v10 = vpop.f32.mrf.mxu0 }
 0x181   : > { %4397 = vst [vmem:[#allocation23_spill] sm:$0xff] %v3083_v10 }
 0x185   : > { %v3085_v11 = vpop.f32.mrf.mxu2 }
 0x186   : > { %v3087_v41 = vpop.f32.mrf.mxu3 }
 0x187   : > { %v705_v13 = vpop.f32.mrf.mxu1 }
 0x188   : > { %v3089_v14 = vpop.f32.mrf.mxu0 }
 0x189   : > { %4398 = vst [vmem:[#allocation24_spill] sm:$0xff] %v3089_v14 }
 0x18a   : > { %2377 = vmatmul.msk.bf16.gmra.mxu1 %vm641_vm3, %v2905_v63  ;;  %2385 = vmatmul.msk.bf16.gmra.mxu2 %vm641_vm3, %v2905_v63 }
 0x18b   : > { %2393 = vmatmul.msk.bf16.gmra.mxu3 %vm641_vm3, %v2905_v63  ;;  %2401 = vmatmul.msk.bf16.gmra.mxu0 %vm641_vm3, %v2905_v63 }
 0x18d   : > { %v3099_v40 = vpop.f32.mrf.mxu2 }
 0x18e   : > { %v3101_v42 = vpop.f32.mrf.mxu3 }
 0x18f   : > { %v707_v45 = vpop.f32.mrf.mxu1 }
 0x190   : > { %v3103_v49 = vpop.f32.mrf.mxu0  ;;  %v708_v1 = vadd.f32 %v707_v45, %v3125_v47 }
 0x191   : > { %4399 = vst [vmem:[#allocation25_spill] sm:$0xff] %v3103_v49  ;;  %v703_v49 = vadd.f32 %v702_v9, %v3125_v47 }
 0x195   : > { %v3105_v50 = vpop.f32.mrf.mxu2 }
 0x196   : > { %v3107_v53 = vpop.f32.mrf.mxu3 }
 0x197   : > { %v710_v38 = vpop.f32.mrf.mxu1 }
 0x198   : > { %v3109_v34 = vpop.f32.mrf.mxu0  ;;  %v711_v21 = vadd.f32 %v710_v38, %v3125_v47 }
 0x199   : > { %4400 = vst [vmem:[#allocation26_spill] sm:$0xff] %v3109_v34  ;;  %v1286_v34 = vmax.f32 %v708_v1, 0.0  ;;  %v696_v1 = vadd.f32 %v3047_v58, %v3125_v47 }
 0x19a   : > { %2378 = vmatmul.msk.bf16.gmra.mxu1 %vm641_vm3, %v2923_v12  ;;  %2386 = vmatmul.msk.bf16.gmra.mxu2 %vm641_vm3, %v2923_v12  ;;  %v1296_v5 = vmax.f32 %v711_v21, 0.0  ;;  %v698_v21 = vadd.f32 %v697_v0, %v3125_v47 }
 0x19b   : > { %2394 = vmatmul.msk.bf16.gmra.mxu3 %vm641_vm3, %v2923_v12  ;;  %2402 = vmatmul.msk.bf16.gmra.mxu0 %vm641_vm3, %v2923_v12  ;;  %v706_v12 = vadd.f32 %v705_v13, %v3125_v47  ;;  %v691_v13 = vadd.f32 %v3017_v46, %v3125_v47  ;;  %v683_v46 = vadd.f32 %v2979_v28, %v3125_v47 }
 0x19c   : > { %v1456_v19 = vmin.f32 %v1296_v5, 6.0  ;;  %v693_v5 = vadd.f32 %v3039_v54, %v3125_v47  ;;  %v688_v54 = vadd.f32 %v3003_v37, %v3125_v47  ;;  %v681_v37 = vadd.f32 %v2963_v24, %v3125_v47 }
 0x19d   : > { %v3127_v25 = vpop.f32.mrf.mxu2  ;;  %v678_v28 = vadd.f32 %v2955_v20, %v3125_v47  ;;  %v676_v24 = vadd.f32 %v2939_v16, %v3125_v47 }
 0x19e   : > { %v3130_v17 = vpop.f32.mrf.mxu3  ;;  %v1226_v45 = vmax.f32 %v693_v5, 0.0 }
 0x19f   : > { %v712_v63 = vpop.f32.mrf.mxu1 }
 0x1a0   : > { %v713_v55 = vadd.f32 %v712_v63, %v3125_v47  ;;  %v3133_v59 = vpop.f32.mrf.mxu0  ;;  %v1276_v63 = vmax.f32 %v706_v12, 0.0 }
 0x1a1   : > { %4401 = vst [vmem:[#allocation27_spill] sm:$0xff] %v3133_v59 }
 0x1a2   : > { %v1306_v10 = vmax.f32 %v713_v55, 0.0  ;;  %v1266_v55 = vmax.f32 %v703_v49, 0.0  ;;  %v1436_v12 = vmin.f32 %v1276_v63, 6.0  ;;  %v686_v63 = vadd.f32 %v2987_v33, %v3125_v47 }
 0x1a4   : > { %v1466_v14 = vmin.f32 %v1306_v10, 6.0  ;;  %v1446_v10 = vmin.f32 %v1286_v34, 6.0  ;;  %v1426_v9 = vmin.f32 %v1266_v55, 6.0  ;;  %v1196_v5 = vmax.f32 %v686_v63, 0.0 }
 0x1a5   : > { %v761_v43 = vpop.f32.mrf.mxu2 }
 0x1a6   : > { %v3138_v38 = vpop.f32.mrf.mxu3  ;;  %1486 = vmatpush.msra.mxu3 %v1466_v14  ;;  %v1416_v14 = vmin.f32 %v1256_v4, 6.0 }
 0x1a7   : > { %v3141_v27 = vpop.f32.mrf.mxu1 }
 0x1a8   : > { %v3143_v59 = vpop.f32.mrf.mxu0  ;;  %1487 = vmatpush.msra.mxu3 %v1456_v19  ;;  %v1246_v19 = vmax.f32 %v698_v21, 0.0  ;;  %v1216_v21 = vmax.f32 %v691_v13, 0.0  ;;  %v1186_v13 = vmax.f32 %v683_v46, 0.0 }
 0x1aa   : > { %2403 = vmatmul.msk.bf16.vlgmr.msra.gmra.mxu1 %vm641_vm3, %v2797_v52  ;;  %2411 = vmatmul.msk.bf16.vlgmr.msra.gmra.mxu2 %vm641_vm3, %v2797_v52  ;;  %v1236_v52 = vmax.f32 %v696_v1, 0.0  ;;  %v1406_v49 = vmin.f32 %v1246_v19, 6.0  ;;  %v1386_v1 = vmin.f32 %v1226_v45, 6.0  ;;  %v1376_v19 = vmin.f32 %v1216_v21, 6.0 }
 0x1ab   : > { %1488 = vmatpush.msra.mxu3 %v1446_v10  ;;  %v1206_v10 = vmax.f32 %v688_v54, 0.0  ;;  %v1176_v54 = vmax.f32 %v681_v37, 0.0  ;;  %v1356_v45 = vmin.f32 %v1196_v5, 6.0  ;;  %v1346_v63 = vmin.f32 %v1186_v13, 6.0 }
 0x1ac   : > { %v1396_v55 = vmin.f32 %v1236_v52, 6.0  ;;  %v4374_v37 = vlaneseq }
 0x1ad   : > { %1489 = vmatpush.msra.mxu3 %v1436_v12  ;;  %v3154_v0 = vpop.f32.mrf.mxu2  ;;  %v1366_v52 = vmin.f32 %v1206_v10, 6.0  ;;  %v1156_v10 = vmax.f32 %v676_v24, 0.0 }
 0x1ae   : > { %4402 = vst [vmem:[#allocation28_spill] sm:$0xff] %v3154_v0  ;;  %v3156_v34 = vpop.f32.mrf.mxu3 }
 0x1af   : > { %4403 = vst [vmem:[#allocation29_spill] sm:$0xff] %v3156_v34  ;;  %1490 = vmatpush.msra.mxu3 %v1426_v9  ;;  %v3160_v58 = vpop.f32.mrf.mxu1  ;;  %v1316_v13 = vmin.f32 %v1156_v10, 6.0 }
 0x1b0   : > { %v3162_v23 = vpop.f32.mrf.mxu0 }
 0x1b1   : > { %1491 = vmatpush.msra.mxu3 %v1416_v14  ;;  %v3183_v14 = vperm.slane %v3114_v29, 1 }
 0x1b3   : > { %1492 = vmatpush.msra.mxu3 %v1406_v49  ;;  %v762_v20 = vadd.f32 %v761_v43, %v3183_v14  ;;  %v1166_v49 = vmax.f32 %v678_v28, 0.0  ;;  %v757_v16 = vadd.f32 %v3105_v50, %v3183_v14  ;;  %v3207_v28 = vand.u32 127, %v4374_v37 }
 0x1b5   : > { %1493 = vmatpush.msra.mxu3 %v1396_v55  ;;  %v3170_v4 = vpop.f32.mrf.mxu2  ;;  %v760_v55 = vadd.f32 %v3127_v25, %v3183_v14  ;;  %v1307_v47 = vmax.f32 %v762_v20, 0.0  ;;  %v1326_v5 = vmin.f32 %v1166_v49, 6.0  ;;  %v1287_v24 = vmax.f32 %v757_v16, 0.0 }
 0x1b6   : > { %4404 = vst [vmem:[#allocation30_spill] sm:$0xff] %v3170_v4  ;;  %v3172_v12 = vpop.f32.mrf.mxu3  ;;  %vm1481_vm4 = vcmp.lt.s32.totalorder %v3207_v28, 32  ;;  %v4430_v4 = vld [vmem:[#allocation19_spill] sm:$0xff]  ;;  %v1795_v28 = vld [vmem:[%s4365_s5 + $0x1e8] sm:$0xff] }
 0x1b7   : > { %4405 = vst [vmem:[#allocation31_spill] sm:$0xff] %v3172_v12  ;;  %1494 = vmatpush.msra.mxu3 %v1386_v1  ;;  %v3176_v33 = vpop.f32.mrf.mxu1  ;;  %v1297_v25 = vmax.f32 %v760_v55, 0.0  ;;  %v1467_v50 = vmin.f32 %v1307_v47, 6.0  ;;  %v4375_v55 = vmov 1.0  }
 0x1b8   : > { %v3178_v9 = vpop.f32.mrf.mxu0 }
 0x1b9   : > { %1495 = vmatpush.msra.mxu3 %v1376_v19  ;;  %v755_v19 = vadd.f32 %v3099_v40, %v3183_v14  ;;  %v1457_v20 = vmin.f32 %v1297_v25, 6.0 }
 0x1ba   : > { %2404 = vmatmul.msk.bf16.gmra.mxu1 %vm641_vm3, %v2809_v61  ;;  %2412 = vmatmul.msk.bf16.gmra.mxu2 %vm641_vm3, %v2809_v61  ;;  %v1336_v61 = vmin.f32 %v1176_v54, 6.0 }
 0x1bb   : > { %1496 = vmatpush.msra.mxu3 %v1366_v52  ;;  %v752_v52 = vadd.f32 %v3085_v11, %v3183_v14  ;;  %v1277_v40 = vmax.f32 %v755_v19, 0.0  ;;  %v747_v11 = vadd.f32 %v3065_v2, %v3183_v14  ;;  %v742_v2 = vadd.f32 %v3043_v56, %v3183_v14 }
 0x1bd   : > { %1497 = vmatpush.msra.mxu3 %v1356_v45  ;;  %v3192_v21 = vpop.f32.mrf.mxu2  ;;  %v750_v45 = vadd.f32 %v3079_v7, %v3183_v14  ;;  %v1267_v10 = vmax.f32 %v752_v52, 0.0  ;;  %v745_v7 = vadd.f32 %v3059_v60, %v3183_v14  ;;  %v1247_v19 = vmax.f32 %v747_v11, 0.0 }
 0x1be   : > { %4406 = vst [vmem:[#allocation32_spill] sm:$0xff] %v3192_v21  ;;  %v3196_v46 = vpop.f32.mrf.mxu3  ;;  %v740_v60 = vadd.f32 %v3029_v48, %v3183_v14  ;;  %v735_v11 = vadd.f32 %v2999_v35, %v3183_v14 }
 0x1bf   : > { %4407 = vst [vmem:[#allocation33_spill] sm:$0xff] %v3196_v46  ;;  %1498 = vmatpush.msra.mxu3 %v1346_v63  ;;  %v3198_v1 = vpop.f32.mrf.mxu1  ;;  %v1257_v47 = vmax.f32 %v750_v45, 0.0  ;;  %v1427_v25 = vmin.f32 %v1267_v10, 6.0  ;;  %v1237_v52 = vmax.f32 %v745_v7, 0.0  ;;  %v1407_v56 = vmin.f32 %v1247_v19, 6.0 }
 0x1c0   : > { %v3202_v43 = vpop.f32.mrf.mxu0  ;;  %v1217_v10 = vmax.f32 %v740_v60, 0.0  ;;  %v727_v60 = vadd.f32 %v2959_v22, %v3183_v14 }
 0x1c1   : > { %1499 = vmatpush.msra.mxu3 %v1336_v61  ;;  %v1447_v61 = vmin.f32 %v1287_v24, 6.0  ;;  %v1417_v24 = vmin.f32 %v1257_v47, 6.0  ;;  %v1397_v48 = vmin.f32 %v1237_v52, 6.0 }
 0x1c2   : > { %v1377_v19 = vmin.f32 %v1217_v10, 6.0 }
 0x1c3   : > { %1500 = vmatpush.msra.mxu3 %v1326_v5  ;;  %v1437_v5 = vmin.f32 %v1277_v40, 6.0  ;;  %v1227_v40 = vmax.f32 %v742_v2, 0.0  ;;  %v1197_v2 = vmax.f32 %v735_v11, 0.0  ;;  %v1167_v11 = vmax.f32 %v727_v60, 0.0 }
 0x1c5   : > { %1501 = vmatpush.msra.mxu3 %v1316_v13  ;;  %v3212_v54 = vpop.f32.mrf.mxu2  ;;  %v1387_v47 = vmin.f32 %v1227_v40, 6.0 }
 0x1c6   : > { %4408 = vst [vmem:[#allocation34_spill] sm:$0xff] %v3212_v54  ;;  %v3216_v49 = vpop.f32.mrf.mxu3  ;;  %2420 = vmatmul.msk.f32.vlgmr.msra.gmra.mxu3 %vm1481_vm4, %v4375_v55 }
 0x1c7   : > { %4409 = vst [vmem:[#allocation35_spill] sm:$0xff] %v3216_v49  ;;  %1506 = vmatpush.msrb.mxu3 %v1467_v50  ;;  %v3218_v63 = vpop.f32.mrf.mxu1  ;;  %v4433_v49 = vld [vmem:[#allocation11_spill] sm:$0xff] }
 0x1c8   : > { %v3225_v16 = vpop.f32.mrf.mxu0 }
 0x1c9   : > { %1507 = vmatpush.msrb.mxu3 %v1457_v20 }
 0x1ca   : > { %2405 = vmatmul.msk.bf16.gmra.mxu1 %vm641_vm3, %v2821_v6  ;;  %2413 = vmatmul.msk.bf16.gmra.mxu2 %vm641_vm3, %v2821_v6  ;;  %v737_v6 = vadd.f32 %v3007_v39, %v3183_v14  ;;  %v730_v39 = vadd.f32 %v2975_v26, %v3183_v14  ;;  %v725_v26 = vadd.f32 %v2951_v18, %v3183_v14 }
 0x1cb   : > { %1508 = vmatpush.msrb.mxu3 %v1447_v61  ;;  %v732_v61 = vadd.f32 %v2983_v31, %v3183_v14 }
 0x1cc   : > { %v1207_v7 = vmax.f32 %v737_v6, 0.0  ;;  %v3264_v6 = vperm.slane %v3114_v29, 2  ;;  %v1177_v40 = vmax.f32 %v730_v39, 0.0  ;;  %v1157_v18 = vmax.f32 %v725_v26, 0.0 }
 0x1cd   : > { %1509 = vmatpush.msrb.mxu3 %v1437_v5  ;;  %v3235_v13 = vpop.f32.mrf.mxu2  ;;  %v1187_v52 = vmax.f32 %v732_v61, 0.0 }
 0x1ce   : > { %4410 = vst [vmem:[#allocation36_spill] sm:$0xff] %v3235_v13  ;;  %v3239_v50 = vpop.f32.mrf.mxu3  ;;  %v1367_v31 = vmin.f32 %v1207_v7, 6.0  ;;  %v811_v22 = vadd.f32 %v3138_v38, %v3264_v6  ;;  %v1337_v14 = vmin.f32 %v1177_v40, 6.0  ;;  %v1317_v60 = vmin.f32 %v1157_v18, 6.0 }
 0x1cf   : > { %4411 = vst [vmem:[#allocation37_spill] sm:$0xff] %v3239_v50  ;;  %1510 = vmatpush.msrb.mxu3 %v1427_v25  ;;  %v3241_v45 = vpop.f32.mrf.mxu1  ;;  %v1347_v10 = vmin.f32 %v1187_v52, 6.0  ;;  %v801_v52 = vadd.f32 %v3087_v41, %v3264_v6  ;;  %v796_v41 = vadd.f32 %v3067_v3, %v3264_v6  ;;  %v794_v18 = vadd.f32 %v3061_v62, %v3264_v6 }
 0x1d0   : > { %v3245_v20 = vpop.f32.mrf.mxu0  ;;  %v1308_v38 = vmax.f32 %v811_v22, 0.0 }
 0x1d1   : > { %1511 = vmatpush.msrb.mxu3 %v1417_v24  ;;  %v1248_v3 = vmax.f32 %v796_v41, 0.0  ;;  %v781_v41 = vadd.f32 %v2985_v32, %v3264_v6 }
 0x1d2   : > { %v1468_v26 = vmin.f32 %v1308_v38, 6.0  ;;  %v791_v38 = vadd.f32 %v3045_v57, %v3264_v6 }
 0x1d3   : > { %1512 = vmatpush.msrb.mxu3 %v1407_v56  ;;  %v1357_v56 = vmin.f32 %v1197_v2, 6.0 }
 0x1d4   : > { %v1228_v57 = vmax.f32 %v791_v38, 0.0 }
 0x1d5   : > { %1513 = vmatpush.msrb.mxu3 %v1397_v48  ;;  %v3251_v5 = vpop.f32.mrf.mxu2  ;;  %v809_v48 = vadd.f32 %v3130_v17, %v3264_v6  ;;  %v804_v17 = vadd.f32 %v3101_v42, %v3264_v6  ;;  %v1268_v42 = vmax.f32 %v801_v52, 0.0 }
 0x1d6   : > { %4412 = vst [vmem:[#allocation38_spill] sm:$0xff] %v3251_v5  ;;  %v3255_v25 = vpop.f32.mrf.mxu3 }
 0x1d7   : > { %4413 = vst [vmem:[#allocation39_spill] sm:$0xff] %v3255_v25  ;;  %1514 = vmatpush.msrb.mxu3 %v1387_v47  ;;  %v3257_v35 = vpop.f32.mrf.mxu1  ;;  %v806_v47 = vadd.f32 %v3107_v53, %v3264_v6  ;;  %v799_v53 = vadd.f32 %v3081_v8, %v3264_v6  ;;  %v1278_v40 = vmax.f32 %v804_v17, 0.0  ;;  %v789_v17 = vadd.f32 %v3037_v51, %v3264_v6 }
 0x1d8   : > { %v3261_v24 = vpop.f32.mrf.mxu0  ;;  %v784_v51 = vadd.f32 %v3001_v36, %v3264_v6  ;;  %v4418_v36 = vld [vmem:[#allocation12_spill] sm:$0xff] }
 0x1d9   : > { %1515 = vmatpush.msrb.mxu3 %v1377_v19  ;;  %v1298_v19 = vmax.f32 %v809_v48, 0.0 }
 0x1da   : > { %2406 = vmatmul.msk.bf16.gmra.mxu1 %vm641_vm3, %v2833_v15  ;;  %2414 = vmatmul.msk.bf16.gmra.mxu2 %vm641_vm3, %v2833_v15  ;;  %v1327_v15 = vmin.f32 %v1167_v11, 6.0 }
 0x1db   : > { %1516 = vmatpush.msrb.mxu3 %v1367_v31  ;;  %v1288_v31 = vmax.f32 %v806_v47, 0.0  ;;  %v1438_v47 = vmin.f32 %v1278_v40, 6.0  ;;  %v1218_v40 = vmax.f32 %v789_v17, 0.0  ;;  %v1188_v17 = vmax.f32 %v781_v41, 0.0 }
 0x1dd   : > { %1517 = vmatpush.msrb.mxu3 %v1357_v56  ;;  %v3276_v61 = vpop.f32.mrf.mxu2  ;;  %v1458_v56 = vmin.f32 %v1298_v19, 6.0  ;;  %v1238_v19 = vmax.f32 %v794_v18, 0.0 }
 0x1de   : > { %4414 = vst [vmem:[#allocation40_spill] sm:$0xff] %v3276_v61  ;;  %v3278_v7 = vpop.f32.mrf.mxu3 }
 0x1df   : > { %4415 = vst [vmem:[#allocation41_spill] sm:$0xff] %v3278_v7  ;;  %1518 = vmatpush.msrb.mxu3 %v1347_v10  ;;  %v3282_v39 = vpop.f32.mrf.mxu1  ;;  %v1448_v10 = vmin.f32 %v1288_v31, 6.0  ;;  %v786_v31 = vadd.f32 %v3015_v44, %v3264_v6  ;;  %v4417_v44 = vld [vmem:[#allocation14_spill] sm:$0xff] }
 0x1e0   : > { %v3284_v2 = vpop.f32.mrf.mxu0  ;;  %v779_v18 = vadd.f32 %v4417_v44, %v3264_v6  ;;  %v4421_v44 = vld [vmem:[#allocation6_spill] sm:$0xff] }
 0x1e1   : > { %1519 = vmatpush.msrb.mxu3 %v1337_v14  ;;  %v1258_v14 = vmax.f32 %v799_v53, 0.0 }
 0x1e3   : > { %1520 = vmatpush.msrb.mxu3 %v1327_v15  ;;  %v1428_v15 = vmin.f32 %v1268_v42, 6.0  ;;  %v1418_v62 = vmin.f32 %v1258_v14, 6.0  ;;  %v1208_v42 = vmax.f32 %v786_v31, 0.0  ;;  %v1198_v14 = vmax.f32 %v784_v51, 0.0 }
 0x1e4   : > { %v1178_v51 = vmax.f32 %v779_v18, 0.0 }
 0x1e5   : > { %1521 = vmatpush.msrb.mxu3 %v1317_v60  ;;  %v3292_v22 = vpop.f32.mrf.mxu2 }
 0x1e6   : > { %v3294_v11 = vpop.f32.mrf.mxu3  ;;  %2421 = vmatmul.msk.f32.vlgmr.msrb.gmra.mxu3 %vm1481_vm4, %v4375_v55 }
 0x1e7   : > { %1526 = vmatpush.msra.mxu3 %v1468_v26  ;;  %4416 = vst [vmem:[#allocation42_spill] sm:$0xff] %v3294_v11  ;;  %v3301_v48 = vpop.f32.mrf.mxu1  ;;  %v1408_v26 = vmin.f32 %v1248_v3, 6.0 }
 0x1e8   : > { %v3303_v8 = vpop.f32.mrf.mxu0 }
 0x1e9   : > { %1527 = vmatpush.msra.mxu3 %v1458_v56  ;;  %v1398_v56 = vmin.f32 %v1238_v19, 6.0  ;;  %v1368_v19 = vmin.f32 %v1208_v42, 6.0  ;;  %v1348_v42 = vmin.f32 %v1188_v17, 6.0 }
 0x1ea   : > { %2407 = vmatmul.msk.bf16.gmra.mxu1 %vm641_vm3, %v2857_v30  ;;  %2415 = vmatmul.msk.bf16.gmra.mxu2 %vm641_vm3, %v2857_v30 }
 0x1eb   : > { %1528 = vmatpush.msra.mxu3 %v1448_v10  ;;  %v1388_v10 = vmin.f32 %v1228_v57, 6.0  ;;  %v4419_v57 = vld [vmem:[#allocation10_spill] sm:$0xff] }
 0x1ed   : > { %1529 = vmatpush.msra.mxu3 %v1438_v47  ;;  %v3315_v60 = vpop.f32.mrf.mxu2  ;;  %v1378_v47 = vmin.f32 %v1218_v40, 6.0  ;;  %v1358_v40 = vmin.f32 %v1198_v14, 6.0  ;;  %v4423_v14 = vld [vmem:[#allocation25_spill] sm:$0xff] }
 0x1ee   : > { %v3317_v52 = vpop.f32.mrf.mxu3 }
 0x1ef   : > { %1530 = vmatpush.msra.mxu3 %v1428_v15  ;;  %v3321_v53 = vpop.f32.mrf.mxu1  ;;  %v776_v15 = vadd.f32 %v4418_v36, %v3264_v6 }
 0x1f0   : > { %v3323_v30 = vpop.f32.mrf.mxu0 }
 0x1f1   : > { %1531 = vmatpush.msra.mxu3 %v1418_v62  ;;  %v3340_v62 = vperm.slane %v3114_v29, 3  ;;  %v1168_v41 = vmax.f32 %v776_v15, 0.0 }
 0x1f3   : > { %1532 = vmatpush.msra.mxu3 %v1408_v26  ;;  %v774_v26 = vadd.f32 %v4419_v57, %v3264_v6  ;;  %v1338_v6 = vmin.f32 %v1178_v51, 6.0  ;;  %v1328_v15 = vmin.f32 %v1168_v41, 6.0  ;;  %v4425_v51 = vld [vmem:[#allocation23_spill] sm:$0xff]  ;;  %v840_v46 = vadd.f32 %v4430_v4, %v3340_v62  ;;  %v4435_v4 = vld [vmem:[#allocation18_spill] sm:$0xff] }
 0x1f5   : > { %1533 = vmatpush.msra.mxu3 %v1398_v56  ;;  %v3331_v38 = vpop.f32.mrf.mxu2  ;;  %v4420_v56 = vld [vmem:[#allocation27_spill] sm:$0xff]  ;;  %v1158_v37 = vmax.f32 %v774_v26, 0.0 }
 0x1f6   : > { %v3333_v3 = vpop.f32.mrf.mxu3 }
 0x1f7   : > { %1534 = vmatpush.msra.mxu3 %v1388_v10  ;;  %v3337_v32 = vpop.f32.mrf.mxu1  ;;  %v860_v10 = vadd.f32 %v4420_v56, %v3340_v62  ;;  %v1318_v26 = vmin.f32 %v1158_v37, 6.0  ;;  %v4428_v37 = vld [vmem:[#allocation21_spill] sm:$0xff] }
 0x1f8   : > { %v3342_v31 = vpop.f32.mrf.mxu0 }
 0x1f9   : > { %1535 = vmatpush.msra.mxu3 %v1378_v47  ;;  %v4422_v47 = vld [vmem:[#allocation26_spill] sm:$0xff]  ;;  %v1309_v57 = vmax.f32 %v860_v10, 0.0 }
 0x1fa   : > { %2408 = vmatmul.msk.bf16.gmra.mxu1 %vm641_vm3, %v4421_v44  ;;  %2416 = vmatmul.msk.bf16.gmra.mxu2 %vm641_vm3, %v4421_v44  ;;  %v858_v36 = vadd.f32 %v4422_v47, %v3340_v62  ;;  %v4426_v10 = vld [vmem:[#allocation22_spill] sm:$0xff] }
 0x1fb   : > { %1536 = vmatpush.msra.mxu3 %v1368_v19  ;;  %v855_v19 = vadd.f32 %v4423_v14, %v3340_v62  ;;  %v1469_v14 = vmin.f32 %v1309_v57, 6.0  ;;  %v848_v41 = vadd.f32 %v4426_v10, %v3340_v62 }
 0x1fc   : > { %v1299_v55 = vmax.f32 %v858_v36, 0.0  ;;  %v845_v36 = vadd.f32 %v4428_v37, %v3340_v62 }
 0x1fd   : > { %1537 = vmatpush.msra.mxu3 %v1358_v40  ;;  %v3354_v18 = vpop.f32.mrf.mxu2  ;;  %v4424_v40 = vld [vmem:[#allocation24_spill] sm:$0xff]  ;;  %v1289_v34 = vmax.f32 %v855_v19, 0.0 }
 0x1fe   : > { %v3358_v56 = vpop.f32.mrf.mxu3  ;;  %v853_v44 = vadd.f32 %v4424_v40, %v3340_v62  ;;  %v1459_v0 = vmin.f32 %v1299_v55, 6.0  ;;  %v4427_v40 = vmov 1.0   ;;  %v1249_v21 = vmax.f32 %v845_v36, 0.0 }
 0x1ff   : > { %1538 = vmatpush.msra.mxu3 %v1348_v42  ;;  %v3360_v17 = vpop.f32.mrf.mxu1  ;;  %v850_v42 = vadd.f32 %v4425_v51, %v3340_v62  ;;  %v1449_v51 = vmin.f32 %v1289_v34, 6.0  ;;  %v4431_v34 = vld [vmem:[#allocation7_spill] sm:$0xff]  ;;  %v838_v36 = vadd.f32 %v4435_v4, %v3340_v62 }
 0x200   : > { %v3364_v47 = vpop.f32.mrf.mxu0  ;;  %v1409_v5 = vmin.f32 %v1249_v21, 6.0 }
 0x201   : > { %1539 = vmatpush.msra.mxu3 %v1338_v6  ;;  %v1279_v6 = vmax.f32 %v853_v44, 0.0  ;;  %v4429_v44 = vld [vmem:[#allocation20_spill] sm:$0xff]  ;;  %v1219_v7 = vmax.f32 %v838_v36, 0.0 }
 0x202   : > { %v843_v55 = vadd.f32 %v4429_v44, %v3340_v62  ;;  %v825_v44 = vadd.f32 %v4433_v49, %v3340_v62  ;;  %v4438_v49 = vld [vmem:[#allocation17_spill] sm:$0xff] }
 0x203   : > { %1540 = vmatpush.msra.mxu3 %v1328_v15  ;;  %v1269_v15 = vmax.f32 %v850_v42, 0.0  ;;  %v835_v13 = vadd.f32 %v4438_v49, %v3340_v62 }
 0x205   : > { %1541 = vmatpush.msra.mxu3 %v1318_v26  ;;  %v3370_v12 = vpop.f32.mrf.mxu2  ;;  %v1259_v26 = vmax.f32 %v848_v41, 0.0  ;;  %v1429_v37 = vmin.f32 %v1269_v15, 6.0  ;;  %v4434_v41 = vld [vmem:[#allocation13_spill] sm:$0xff]  ;;  %v1239_v15 = vmax.f32 %v843_v55, 0.0  ;;  %v3410_v55 = vperm.slane %v3114_v29, 4 }
 0x206   : > { %2422 = vmatmul.msk.f32.vlgmr.msra.gmra.mxu3 %vm1481_vm4, %v4427_v40  ;;  %v3377_v19 = vpop.f32.mrf.mxu3  ;;  %v1209_v61 = vmax.f32 %v835_v13, 0.0 }
 0x207   : > { %1546 = vmatpush.msrb.mxu3 %v1469_v14  ;;  %v3379_v57 = vpop.f32.mrf.mxu1  ;;  %v1439_v14 = vmin.f32 %v1279_v6, 6.0  ;;  %v828_v6 = vadd.f32 %v4434_v41, %v3340_v62  ;;  %v3423_v11 = vadd.f32 %v3141_v27, %v3410_v55 }
 0x208   : > { %v3383_v10 = vpop.f32.mrf.mxu0 }
 0x209   : > { %1547 = vmatpush.msrb.mxu3 %v1459_v0  ;;  %v4432_v0 = vld [vmem:[#allocation9_spill] sm:$0xff] }
 0x20a   : > { %2409 = vmatmul.msk.bf16.gmra.mxu1 %vm641_vm3, %v4431_v34  ;;  %v823_v42 = vadd.f32 %v4432_v0, %v3340_v62  ;;  %2417 = vmatmul.msk.bf16.gmra.mxu2 %vm641_vm3, %v4431_v34  ;;  %v4437_v0 = vld [vmem:[#allocation16_spill] sm:$0xff]  ;;  %v1229_v34 = vmax.f32 %v840_v46, 0.0 }
 0x20b   : > { %1548 = vmatpush.msrb.mxu3 %v1449_v51  ;;  %v1419_v51 = vmin.f32 %v1259_v26, 6.0  ;;  %v833_v50 = vadd.f32 %v4437_v0, %v3340_v62  ;;  %v3413_v26 = vperm.slane %v3114_v29, 7  ;;  %v1179_v0 = vmax.f32 %v828_v6, 0.0 }
 0x20c   : > { %v1159_v4 = vmax.f32 %v823_v42, 0.0 }
 0x20d   : > { %1549 = vmatpush.msrb.mxu3 %v1439_v14  ;;  %v4436_v14 = vld [vmem:[#allocation15_spill] sm:$0xff]  ;;  %v3405_v25 = vpop.f32.mrf.mxu2  ;;  %v1199_v46 = vmax.f32 %v833_v50, 0.0  ;;  %v1339_v36 = vmin.f32 %v1179_v0, 6.0  ;;  %v3437_v27 = vadd.f32 %v3162_v23, %v3413_v26  ;;  %v3461_v0 = vadd.f32 %v3198_v1, %v3410_v55 }
 0x20e   : > { %v830_v54 = vadd.f32 %v4436_v14, %v3340_v62  ;;  %v3407_v41 = vpop.f32.mrf.mxu3  ;;  %v1169_v14 = vmax.f32 %v825_v44, 0.0  ;;  %v1399_v62 = vmin.f32 %v1239_v15, 6.0  ;;  %v3419_v42 = vmin.f32 %v1159_v4, 6.0 }
 0x20f   : > { %1550 = vmatpush.msrb.mxu3 %v1429_v37  ;;  %v3415_v37 = vpop.f32.mrf.mxu1  ;;  %v3427_v44 = vadd.f32 %v3143_v59, %v3413_v26  ;;  %v1379_v15 = vmin.f32 %v1219_v7, 6.0  ;;  %v1359_v50 = vmin.f32 %v1199_v46, 6.0  ;;  %v3442_v59 = vperm.slane %v3114_v29, 5 }
 0x210   : > { %v3417_v49 = vpop.f32.mrf.mxu0  ;;  %v1189_v21 = vmax.f32 %v830_v54, 0.0  ;;  %v3429_v6 = vmin.f32 %v1169_v14, 6.0  ;;  %v3433_v54 = vadd.f32 %v3160_v58, %v3410_v55  ;;  %v3445_v4 = vperm.slane %v3114_v29, 6  ;;  %v4440_v14 = vld [vmem:[#allocation8_spill] sm:$0xff] }
 0x211   : > { %1551 = vmatpush.msrb.mxu3 %v1419_v51  ;;  %v1389_v51 = vmin.f32 %v1229_v34, 6.0  ;;  %4439 = vst [vmem:[#allocation14_spill] sm:$0xff] %v3427_v44  ;;  %v3449_v58 = vadd.f32 %v3176_v33, %v3410_v55  ;;  %v3453_v7 = vadd.f32 %v3178_v9, %v3413_v26  ;;  %v3465_v29 = vadd.f32 %v3202_v43, %v3413_v26 }
 0x212   : > { %v1349_v13 = vmin.f32 %v1189_v21, 6.0  ;;  %v3470_v9 = vadd.f32 %v3218_v63, %v3410_v55  ;;  %v3474_v21 = vadd.f32 %v3225_v16, %v3413_v26  ;;  %v3478_v46 = vadd.f32 %v3241_v45, %v3410_v55 }
 0x213   : > { %1552 = vmatpush.msrb.mxu3 %v1409_v5  ;;  %v1369_v5 = vmin.f32 %v1209_v61, 6.0  ;;  %v3487_v63 = vadd.f32 %v3257_v35, %v3410_v55  ;;  %v3491_v16 = vadd.f32 %v3261_v24, %v3413_v26  ;;  %v3509_v23 = vadd.f32 %v3301_v48, %v3410_v55 }
 0x214   : > { %v1049_v24 = vadd.f32 %v3383_v10, %v3413_v26 }
 0x215   : > { %1553 = vmatpush.msrb.mxu3 %v1399_v62  ;;  %v3439_v34 = vpop.f32.mrf.mxu2  ;;  %v3522_v62 = vadd.f32 %v3321_v53, %v3410_v55  ;;  %v3535_v53 = vadd.f32 %v3337_v32, %v3410_v55  ;;  %v899_v32 = vadd.f32 %v3360_v17, %v3410_v55 }
 0x216   : > { %v3455_v61 = vpop.f32.mrf.mxu3  ;;  %v953_v10 = vadd.f32 %v3439_v34, %v3442_v59 }
 0x217   : > { %1554 = vmatpush.msrb.mxu3 %v1389_v51  ;;  %v906_v33 = vpop.f32.mrf.mxu1  ;;  %v3483_v51 = vadd.f32 %v3245_v20, %v3413_v26  ;;  %v3501_v20 = vadd.f32 %v3284_v2, %v3413_v26 }
 0x218   : > { %v1053_v1 = vpop.f32.mrf.mxu0 }
 0x219   : > { %1555 = vmatpush.msrb.mxu3 %v1379_v15  ;;  %v1054_v43 = vadd.f32 %v1053_v1, %v3413_v26  ;;  %v1051_v1 = vadd.f32 %v3417_v49, %v3413_v26  ;;  %v1270_v49 = vmax.f32 %v899_v32, 0.0  ;;  %v1283_v32 = vmax.f32 %v1049_v24, 0.0 }
 0x21a   : > { %2410 = vmatmul.msk.bf16.gmra.mxu1 %vm641_vm3, %v4440_v14  ;;  %2418 = vmatmul.msk.bf16.gmra.mxu2 %vm641_vm3, %v4440_v14  ;;  %v3529_v14 = vadd.f32 %v3323_v30, %v3413_v26  ;;  %v3542_v30 = vadd.f32 %v3342_v31, %v3413_v26  ;;  %v1046_v31 = vadd.f32 %v3364_v47, %v3413_v26 }
 0x21b   : > { %1556 = vmatpush.msrb.mxu3 %v1369_v5  ;;  %v3497_v5 = vadd.f32 %v3282_v39, %v3410_v55  ;;  %v3513_v39 = vadd.f32 %v3303_v8, %v3413_v26  ;;  %v1303_v47 = vmax.f32 %v1054_v43, 0.0 }
 0x21d   : > { %1557 = vmatpush.msrb.mxu3 %v1359_v50  ;;  %v955_v15 = vpop.f32.mrf.mxu2 }
 0x21e   : > { %v1004_v50 = vpop.f32.mrf.mxu3  ;;  %v956_v17 = vadd.f32 %v955_v15, %v3442_v59  ;;  %v1002_v15 = vadd.f32 %v3455_v61, %v3445_v4  ;;  %v948_v61 = vadd.f32 %v3370_v12, %v3442_v59  ;;  %v995_v12 = vadd.f32 %v3358_v56, %v3445_v4 }
 0x21f   : > { %1558 = vmatpush.msrb.mxu3 %v1349_v13  ;;  %v907_v13 = vadd.f32 %v906_v33, %v3410_v55  ;;  %v908_v8 = vpop.f32.mrf.mxu1  ;;  %v904_v33 = vadd.f32 %v3415_v37, %v3410_v55  ;;  %v902_v37 = vadd.f32 %v3379_v57, %v3410_v55  ;;  %v992_v56 = vadd.f32 %v3333_v3, %v3445_v4 }
 0x220   : > { %v1055_v35 = vpop.f32.mrf.mxu0  ;;  %v1301_v34 = vmax.f32 %v956_v17, 0.0  ;;  %v1443_v17 = vmin.f32 %v1283_v32, 6.0  ;;  %v943_v32 = vadd.f32 %v3331_v38, %v3442_v59  ;;  %v941_v38 = vadd.f32 %v3315_v60, %v3442_v59 }
 0x221   : > { %1559 = vmatpush.msrb.mxu3 %v1339_v36  ;;  %v909_v36 = vadd.f32 %v908_v8, %v3410_v55  ;;  %v1056_v48 = vadd.f32 %v1055_v35, %v3413_v26  ;;  %v1300_v2 = vmax.f32 %v907_v13, 0.0  ;;  %v1290_v35 = vmax.f32 %v904_v33, 0.0 }
 0x222   : > { %v1273_v55 = vmax.f32 %v1046_v31, 0.0  ;;  %v1293_v13 = vmax.f32 %v1051_v1, 0.0  ;;  %v1280_v44 = vmax.f32 %v902_v37, 0.0  ;;  %v1463_v33 = vmin.f32 %v1303_v47, 6.0 }
 0x223   : > { %1560 = vmatpush.msrb.mxu3 %v3429_v6  ;;  %v1310_v8 = vmax.f32 %v909_v36, 0.0  ;;  %v1313_v45 = vmax.f32 %v1056_v48, 0.0  ;;  %v1460_v26 = vmin.f32 %v1300_v2, 6.0  ;;  %v1450_v1 = vmin.f32 %v1290_v35, 6.0 }
 0x224   : > { %v1000_v37 = vadd.f32 %v3407_v41, %v3445_v4  ;;  %v1453_v24 = vmin.f32 %v1293_v13, 6.0  ;;  %v1440_v47 = vmin.f32 %v1280_v44, 6.0  ;;  %v1292_v35 = vmax.f32 %v1002_v15, 0.0 }
 0x225   : > { %1561 = vmatpush.msrb.mxu3 %v3419_v42  ;;  %v1470_v57 = vmin.f32 %v1310_v8, 6.0  ;;  %v1005_v42 = vadd.f32 %v1004_v50, %v3445_v4  ;;  %v1473_v36 = vmin.f32 %v1313_v45, 6.0  ;;  %v957_v6 = vpop.f32.mrf.mxu2  ;;  %v951_v45 = vadd.f32 %v3405_v25, %v3442_v59 }
 0x226   : > { %2423 = vmatmul.msk.f32.vlgmr.msrb.gmra.mxu3 %vm1481_vm4, %v4427_v40  ;;  %v958_v43 = vadd.f32 %v957_v6, %v3442_v59  ;;  %v1006_v48 = vpop.f32.mrf.mxu3  ;;  %v997_v25 = vadd.f32 %v3377_v19, %v3445_v4  ;;  %v946_v41 = vadd.f32 %v3354_v18, %v3442_v59  ;;  %v1430_v13 = vmin.f32 %v1270_v49, 6.0 }
 0x227   : > { %1566 = vmatpush.msrb.mxu0 %v1470_v57  ;;  %v1007_v31 = vadd.f32 %v1006_v48, %v3445_v4  ;;  %1626 = vmatpush.msra.mxu3 %v1473_v36  ;;  %v3576_v50 = vpop.f32.mrf.mxu1  ;;  %v1302_v8 = vmax.f32 %v1005_v42, 0.0  ;;  %v1291_v57 = vmax.f32 %v953_v10, 0.0  ;;  %v1281_v42 = vmax.f32 %v951_v45, 0.0 }
 0x228   : > { %v1311_v2 = vmax.f32 %v958_v43, 0.0  ;;  %v1461_v43 = vmin.f32 %v1301_v34, 6.0  ;;  %v1433_v44 = vmin.f32 %v1273_v55, 6.0  ;;  %v1282_v10 = vmax.f32 %v1000_v37, 0.0 }
 0x229   : > { %1567 = vmatpush.msrb.mxu0 %v1460_v26  ;;  %v1312_v6 = vmax.f32 %v1007_v31, 0.0  ;;  %1627 = vmatpush.msra.mxu3 %v1463_v33  ;;  %v1462_v48 = vmin.f32 %v1302_v8, 6.0  ;;  %v4441_v18 = vmax.f32 %v3535_v53, 0.0  ;;  %v1271_v15 = vmax.f32 %v948_v61, 0.0 }
 0x22a   : > { %v1471_v36 = vmin.f32 %v1311_v2, 6.0  ;;  %v1451_v33 = vmin.f32 %v1291_v57, 6.0  ;;  %v4442_v55 = vmax.f32 %v3542_v30, 0.0  ;;  %v1272_v45 = vmax.f32 %v997_v25, 0.0  ;;  %v4446_v25 = vld [vmem:[#allocation42_spill] sm:$0xff] }
 0x22b   : > { %1568 = vmatpush.msrb.mxu0 %v1450_v1  ;;  %v1472_v26 = vmin.f32 %v1312_v6, 6.0  ;;  %1628 = vmatpush.msra.mxu3 %v1453_v24  ;;  %v1420_v49 = vmin.f32 %v4441_v18, 6.0  ;;  %v1452_v1 = vmin.f32 %v1292_v35, 6.0  ;;  %v4443_v53 = vmax.f32 %v3522_v62, 0.0 }
 0x22c   : > { %1586 = vmatpush.msrb.mxu1 %v1471_v36  ;;  %v1423_v31 = vmin.f32 %v4442_v55, 6.0  ;;  %v1261_v37 = vmax.f32 %v946_v41, 0.0  ;;  %v1441_v24 = vmin.f32 %v1281_v42, 6.0  ;;  %v990_v3 = vadd.f32 %v3317_v52, %v3445_v4  ;;  %v4448_v41 = vld [vmem:[#allocation40_spill] sm:$0xff] }
 0x22d   : > { %1569 = vmatpush.msrb.mxu0 %v1440_v47  ;;  %1606 = vmatpush.msrb.mxu2 %v1472_v26  ;;  %v3590_v19 = vpop.f32.mrf.mxu2  ;;  %v1410_v2 = vmin.f32 %v4443_v53, 6.0  ;;  %v4444_v30 = vmax.f32 %v3529_v14, 0.0  ;;  %v1262_v6 = vmax.f32 %v995_v12, 0.0  ;;  %v1442_v61 = vmin.f32 %v1282_v10, 6.0  ;;  %v4450_v12 = vld [vmem:[#allocation41_spill] sm:$0xff] }
 0x22e   : > { %1629 = vmatpush.msra.mxu3 %v1443_v17  ;;  %1587 = vmatpush.msrb.mxu1 %v1461_v43  ;;  %v938_v60 = vadd.f32 %v3292_v22, %v3442_v59  ;;  %v4445_v62 = vmax.f32 %v3509_v23, 0.0  ;;  %v1251_v57 = vmax.f32 %v943_v32, 0.0  ;;  %v1431_v36 = vmin.f32 %v1271_v15, 6.0 }
 0x22f   : > { %1570 = vmatpush.msrb.mxu0 %v1430_v13  ;;  %1607 = vmatpush.msrb.mxu2 %v1462_v48  ;;  %v3600_v34 = vpop.f32.mrf.mxu1  ;;  %v1413_v8 = vmin.f32 %v4444_v30, 6.0  ;;  %v987_v52 = vadd.f32 %v4446_v25, %v3445_v4  ;;  %v4447_v14 = vmax.f32 %v3513_v39, 0.0  ;;  %v1252_v35 = vmax.f32 %v992_v56, 0.0 }
 0x230   : > { %1630 = vmatpush.msra.mxu3 %v1433_v44  ;;  %1588 = vmatpush.msrb.mxu1 %v1451_v33  ;;  %v1400_v47 = vmin.f32 %v4445_v62, 6.0  ;;  %v1432_v26 = vmin.f32 %v1272_v45, 6.0  ;;  %v936_v22 = vadd.f32 %v4448_v41, %v3442_v59  ;;  %v4449_v23 = vmax.f32 %v3497_v5, 0.0 }
 0x231   : > { %1571 = vmatpush.msrb.mxu0 %v1420_v49  ;;  %1608 = vmatpush.msrb.mxu2 %v1452_v1  ;;  %v1403_v17 = vmin.f32 %v4447_v14, 6.0  ;;  %v1241_v42 = vmax.f32 %v941_v38, 0.0  ;;  %v1421_v43 = vmin.f32 %v1261_v37, 6.0  ;;  %v985_v44 = vadd.f32 %v4450_v12, %v3445_v4  ;;  %v4452_v49 = vld [vmem:[#allocation38_spill] sm:$0xff]  ;;  %v4456_v37 = vld [vmem:[#allocation36_spill] sm:$0xff] }
 0x232   : > { %1631 = vmatpush.msra.mxu3 %v1423_v31  ;;  %1589 = vmatpush.msrb.mxu1 %v1441_v24  ;;  %v1390_v13 = vmin.f32 %v4449_v23, 6.0  ;;  %v4451_v39 = vmax.f32 %v3501_v20, 0.0  ;;  %v1242_v48 = vmax.f32 %v990_v3, 0.0  ;;  %v1422_v32 = vmin.f32 %v1262_v6, 6.0  ;;  %v4454_v31 = vld [vmem:[#allocation39_spill] sm:$0xff]  ;;  %v4458_v6 = vld [vmem:[#allocation37_spill] sm:$0xff] }
 0x233   : > { %1572 = vmatpush.msrb.mxu0 %v1410_v2  ;;  %1609 = vmatpush.msrb.mxu2 %v1442_v61  ;;  %v933_v5 = vadd.f32 %v4452_v49, %v3442_v59  ;;  %v4453_v15 = vmax.f32 %v3487_v63, 0.0  ;;  %v1231_v56 = vmax.f32 %v938_v60, 0.0  ;;  %v1411_v55 = vmin.f32 %v1251_v57, 6.0  ;;  %v4460_v57 = vld [vmem:[#allocation34_spill] sm:$0xff]  ;;  %v4464_v23 = vld [vmem:[#allocation32_spill] sm:$0xff] }
 0x234   : > { %1632 = vmatpush.msra.mxu3 %v1413_v8  ;;  %1590 = vmatpush.msrb.mxu1 %v1431_v36  ;;  %v1393_v10 = vmin.f32 %v4451_v39, 6.0  ;;  %v982_v20 = vadd.f32 %v4454_v31, %v3445_v4  ;;  %v4455_v45 = vmax.f32 %v3491_v16, 0.0  ;;  %v1232_v38 = vmax.f32 %v987_v52, 0.0  ;;  %v4470_v31 = vld [vmem:[#allocation31_spill] sm:$0xff] }
 0x235   : > { %1573 = vmatpush.msrb.mxu0 %v1400_v47  ;;  %1610 = vmatpush.msrb.mxu2 %v1432_v26  ;;  %v3626_v18 = vpop.f32.mrf.mxu2  ;;  %v1380_v33 = vmin.f32 %v4453_v15, 6.0  ;;  %v1412_v53 = vmin.f32 %v1252_v35, 6.0  ;;  %v931_v63 = vadd.f32 %v4456_v37, %v3442_v59  ;;  %v4457_v24 = vmax.f32 %v3478_v46, 0.0  ;;  %v4472_v37 = vld [vmem:[#allocation28_spill] sm:$0xff] }
 0x236   : > { %1633 = vmatpush.msra.mxu3 %v1403_v17  ;;  %1591 = vmatpush.msrb.mxu1 %v1421_v43  ;;  %v1383_v1 = vmin.f32 %v4455_v45, 6.0  ;;  %v1221_v30 = vmax.f32 %v936_v22, 0.0  ;;  %v1401_v8 = vmin.f32 %v1241_v42, 6.0  ;;  %v980_v16 = vadd.f32 %v4458_v6, %v3445_v4  ;;  %v4462_v17 = vld [vmem:[#allocation35_spill] sm:$0xff] }
 0x237   : > { %1574 = vmatpush.msrb.mxu0 %v1390_v13  ;;  %1611 = vmatpush.msrb.mxu2 %v1422_v32  ;;  %v3636_v2 = vpop.f32.mrf.mxu1  ;;  %v1370_v3 = vmin.f32 %v4457_v24, 6.0  ;;  %v4459_v61 = vmax.f32 %v3483_v51, 0.0  ;;  %v1222_v62 = vmax.f32 %v985_v44, 0.0  ;;  %v1402_v47 = vmin.f32 %v1242_v48, 6.0  ;;  %v4466_v44 = vld [vmem:[#allocation33_spill] sm:$0xff] }
 0x238   : > { %1634 = vmatpush.msra.mxu3 %v1393_v10  ;;  %1592 = vmatpush.msrb.mxu1 %v1411_v55  ;;  %v928_v36 = vadd.f32 %v4460_v57, %v3442_v59  ;;  %v4461_v46 = vmax.f32 %v3470_v9, 0.0  ;;  %v1211_v52 = vmax.f32 %v933_v5, 0.0  ;;  %v1391_v14 = vmin.f32 %v1231_v56, 6.0  ;;  %v4468_v5 = vld [vmem:[#allocation30_spill] sm:$0xff] }
 0x239   : > { %1575 = vmatpush.msrb.mxu0 %v1380_v33  ;;  %v1373_v60 = vmin.f32 %v4459_v61, 6.0  ;;  %1612 = vmatpush.msrb.mxu2 %v1412_v53  ;;  %v977_v35 = vadd.f32 %v4462_v17, %v3445_v4  ;;  %v4463_v51 = vmax.f32 %v3474_v21, 0.0  ;;  %v1212_v41 = vmax.f32 %v982_v20, 0.0  ;;  %v4477_v57 = vld [vmem:[#allocation14_spill] sm:$0xff] }
 0x23a   : > { %1635 = vmatpush.msra.mxu3 %v1383_v1  ;;  %v1360_v25 = vmin.f32 %v4461_v46, 6.0  ;;  %1593 = vmatpush.msrb.mxu1 %v1401_v8  ;;  %v1392_v22 = vmin.f32 %v1232_v38, 6.0  ;;  %v926_v13 = vadd.f32 %v4464_v23, %v3442_v59  ;;  %v4465_v9 = vmax.f32 %v3461_v0, 0.0  ;;  %v4474_v8 = vld [vmem:[#allocation29_spill] sm:$0xff] }
 0x23b   : > { %1576 = vmatpush.msrb.mxu0 %v1370_v3  ;;  %v1363_v26 = vmin.f32 %v4463_v51, 6.0  ;;  %1613 = vmatpush.msrb.mxu2 %v1402_v47  ;;  %v1201_v43 = vmax.f32 %v931_v63, 0.0  ;;  %v1381_v12 = vmin.f32 %v1221_v30, 6.0  ;;  %v975_v39 = vadd.f32 %v4466_v44, %v3445_v4 }
 0x23c   : > { %1636 = vmatpush.msra.mxu3 %v1373_v60  ;;  %v1350_v42 = vmin.f32 %v4465_v9, 6.0  ;;  %1594 = vmatpush.msrb.mxu1 %v1391_v14  ;;  %v4467_v21 = vmax.f32 %v3465_v29, 0.0  ;;  %v1202_v48 = vmax.f32 %v980_v16, 0.0  ;;  %v1382_v32 = vmin.f32 %v1222_v62, 6.0 }
 0x23d   : > { %1577 = vmatpush.msrb.mxu0 %v1360_v25  ;;  %1614 = vmatpush.msrb.mxu2 %v1392_v22  ;;  %v3662_v49 = vpop.f32.mrf.mxu2  ;;  %v923_v0 = vadd.f32 %v4468_v5, %v3442_v59  ;;  %v4469_v15 = vmax.f32 %v3449_v58, 0.0  ;;  %v1191_v56 = vmax.f32 %v928_v36, 0.0  ;;  %v1371_v55 = vmin.f32 %v1211_v52, 6.0 }
 0x23e   : > { %v1353_v10 = vmin.f32 %v4467_v21, 6.0  ;;  %1637 = vmatpush.msra.mxu3 %v1363_v26  ;;  %1595 = vmatpush.msrb.mxu1 %v1381_v12  ;;  %v972_v29 = vadd.f32 %v4470_v31, %v3445_v4  ;;  %v4471_v20 = vmax.f32 %v3453_v7, 0.0  ;;  %v1192_v1 = vmax.f32 %v977_v35, 0.0  ;;  %v1764_v31 = vld [vmem:[%s4365_s5 + $0xf0] sm:$0xff] }
 0x23f   : > { %v1340_v33 = vmin.f32 %v4469_v15, 6.0  ;;  %1578 = vmatpush.msrb.mxu0 %v1350_v42  ;;  %v1372_v38 = vmin.f32 %v1212_v41, 6.0  ;;  %1615 = vmatpush.msrb.mxu2 %v1382_v32  ;;  %v3672_v53 = vpop.f32.mrf.mxu1  ;;  %v921_v58 = vadd.f32 %v4472_v37, %v3442_v59  ;;  %v4473_v63 = vmax.f32 %v3433_v54, 0.0  ;;  %v1749_v15 = vld [vmem:[%s4365_s5 + $0x78] sm:$0xff] }
 0x240   : > { %v1343_v45 = vmin.f32 %v4471_v20, 6.0  ;;  %1638 = vmatpush.msra.mxu3 %v1353_v10  ;;  %v1181_v3 = vmax.f32 %v926_v13, 0.0  ;;  %v1361_v30 = vmin.f32 %v1201_v43, 6.0  ;;  %1596 = vmatpush.msrb.mxu1 %v1371_v55  ;;  %v970_v7 = vadd.f32 %v4474_v8, %v3445_v4  ;;  %v1748_v55 = vld [vmem:[%s4365_s5 + $0x70] sm:$0xff]  ;;  %v1747_v20 = vld [vmem:[%s4365_s5 + $0x68] sm:$0xff]  ;;  %v1745_v37 = vld [vmem:[%s4365_s5 + $0x58] sm:$0xff] }
 0x241   : > { %v1330_v24 = vmin.f32 %v4473_v63, 6.0  ;;  %1579 = vmatpush.msrb.mxu0 %v1340_v33  ;;  %v4475_v6 = vmax.f32 %v3437_v27, 0.0  ;;  %v1182_v61 = vmax.f32 %v975_v39, 0.0  ;;  %v1362_v60 = vmin.f32 %v1202_v48, 6.0  ;;  %1616 = vmatpush.msrb.mxu2 %v1372_v38  ;;  %v1765_v33 = vld [vmem:[%s4365_s5 + $0xf8] sm:$0xff]  ;;  %v1762_v38 = vld [vmem:[%s4365_s5 + $0xe0] sm:$0xff] }
 0x242   : > { %1639 = vmatpush.msra.mxu3 %v1343_v45  ;;  %v4476_v62 = vmax.f32 %v3423_v11, 0.0  ;;  %v1171_v47 = vmax.f32 %v923_v0, 0.0  ;;  %v1351_v54 = vmin.f32 %v1191_v56, 6.0  ;;  %1597 = vmatpush.msrb.mxu1 %v1361_v30  ;;  %v4478_v36 = vmax.f32 %v4477_v57, 0.0  ;;  %v1763_v45 = vld [vmem:[%s4365_s5 + $0xe8] sm:$0xff] }
 0x243   : > { %v1333_v16 = vmin.f32 %v4475_v6, 6.0  ;;  %1580 = vmatpush.msrb.mxu0 %v1330_v24  ;;  %v1172_v25 = vmax.f32 %v972_v29, 0.0  ;;  %v1352_v52 = vmin.f32 %v1192_v1, 6.0  ;;  %1617 = vmatpush.msrb.mxu2 %v1362_v60  ;;  %v1161_v27 = vmax.f32 %v921_v58, 0.0  ;;  %v1746_v1 = vld [vmem:[%s4365_s5 + $0x60] sm:$0xff]  ;;  %v1761_v58 = vld [vmem:[%s4365_s5 + $0xd8] sm:$0xff] }
 0x244   : > { %v1320_v59 = vmin.f32 %v4476_v62, 6.0  ;;  %v1323_v46 = vmin.f32 %v4478_v36, 6.0  ;;  %v1341_v4 = vmin.f32 %v1181_v3, 6.0  ;;  %1598 = vmatpush.msrb.mxu1 %v1351_v54  ;;  %v1162_v14 = vmax.f32 %v970_v7, 0.0  ;;  %v1744_v24 = vld [vmem:[%s4365_s5 + $0x50] sm:$0xff]  ;;  %v1743_v8 = vld [vmem:[%s4365_s5 + $0x48] sm:$0xff] }
 0x245   : > { %1640 = vmatpush.msra.mxu3 %v1333_v16  ;;  %v1342_v17 = vmin.f32 %v1182_v61, 6.0  ;;  %1618 = vmatpush.msrb.mxu2 %v1352_v52  ;;  %v3686_v11 = vpop.f32.mrf.mxu2  ;;  %v1331_v35 = vmin.f32 %v1171_v47, 6.0  ;;  %v1332_v51 = vmin.f32 %v1172_v25, 6.0  ;;  %v1321_v41 = vmin.f32 %v1161_v27, 6.0  ;;  %v1760_v3 = vld [vmem:[%s4365_s5 + $0xd0] sm:$0xff]  ;;  %v1759_v7 = vld [vmem:[%s4365_s5 + $0xc8] sm:$0xff] }
 0x246   : > { %1581 = vmatpush.msrb.mxu0 %v1320_v59  ;;  %1599 = vmatpush.msrb.mxu1 %v1341_v4  ;;  %v1322_v22 = vmin.f32 %v1162_v14, 6.0  ;;  %v1742_v6 = vld [vmem:[%s4365_s5 + $0x40] sm:$0xff]  ;;  %v1741_v61 = vld [vmem:[%s4365_s5 + $0x38] sm:$0xff]  ;;  %v1740_v59 = vld [vmem:[%s4365_s5 + $0x30] sm:$0xff] }
 0x247   : > { %1641 = vmatpush.msra.mxu3 %v1323_v46  ;;  %1619 = vmatpush.msrb.mxu2 %v1342_v17  ;;  %v3691_v26 = vpop.f32.mrf.mxu1  ;;  %v1758_v16 = vld [vmem:[%s4365_s5 + $0xc0] sm:$0xff]  ;;  %v1757_v60 = vld [vmem:[%s4365_s5 + $0xb8] sm:$0xff]  ;;  %v1756_v47 = vld [vmem:[%s4365_s5 + $0xb0] sm:$0xff] }
 0x248   : > { %2427 = vmatmul.msk.f32.vlgmr.msra.gmra.mxu3 %vm1481_vm4, %v4427_v40  ;;  %2424 = vmatmul.msk.f32.vlgmr.msrb.gmra.mxu0 %vm1481_vm4, %v4427_v40  ;;  %v1739_v57 = vld [vmem:[%s4365_s5 + $0x28] sm:$0xff]  ;;  %v1738_v25 = vld [vmem:[%s4365_s5 + $0x20] sm:$0xff]  ;;  %v1737_v4 = vld [vmem:[%s4365_s5 + $0x18] sm:$0xff] }
 0x249   : > { %1600 = vmatpush.msrb.mxu1 %v1331_v35  ;;  %1620 = vmatpush.msrb.mxu2 %v1332_v51  ;;  %v1755_v36 = vld [vmem:[%s4365_s5 + $0xa8] sm:$0xff]  ;;  %v1754_v52 = vld [vmem:[%s4365_s5 + $0xa0] sm:$0xff]  ;;  %v1753_v14 = vld [vmem:[%s4365_s5 + $0x98] sm:$0xff] }
 0x24a   : > { %1937 = vmatpush.msrb.mxu3 %v1765_v33  ;;  %v518_v46 = vld [vmem:[%s4364_s4 + $0x8] sm:$0x3]  ;;  %v1736_v51 = vld [vmem:[%s4365_s5 + $0x10] sm:$0xff] }
 0x24b   : > { %1601 = vmatpush.msrb.mxu1 %v1321_v41  ;;  %1621 = vmatpush.msrb.mxu2 %v1322_v22  ;;  %v3811_v27 = vperm.slane %v518_v46, 0  ;;  %v1752_v41 = vld [vmem:[%s4365_s5 + $0x90] sm:$0xff] }
 0x24c   : > { %2425 = vmatmul.msk.f32.vlgmr.msrb.gmra.mxu1 %vm1481_vm4, %v4427_v40  ;;  %2426 = vmatmul.msk.f32.vlgmr.msrb.gmra.mxu2 %vm1481_vm4, %v4427_v40 }
 0x24d   : > { %v3702_v23 = vpop.f32.mrf.mxu2  ;;  %1917 = vmatpush.msra.mxu2 %v1749_v15  ;;  %1938 = vmatpush.msrb.mxu3 %v1764_v31  ;;  %v1751_v31 = vld [vmem:[%s4365_s5 + $0x88] sm:$0xff] }
 0x24f   : > { %v3704_v13 = vpop.f32.mrf.mxu1  ;;  %1918 = vmatpush.msra.mxu2 %v1748_v55  ;;  %1939 = vmatpush.msrb.mxu3 %v1763_v45  ;;  %v1735_v55 = vld [vmem:[%s4365_s5 + $0x8] sm:$0xff] }
 0x251   : > { %1919 = vmatpush.msra.mxu2 %v1747_v20  ;;  %1940 = vmatpush.msrb.mxu3 %v1762_v38  ;;  %v1734_v38 = vld [vmem:[%s4365_s5] sm:$0xff] }
 0x253   : > { %1920 = vmatpush.msra.mxu2 %v1746_v1  ;;  %1941 = vmatpush.msrb.mxu3 %v1761_v58  ;;  %v3842_v58 = vperm.slane %v518_v46, 1 }
 0x255   : > { %v3706_v9 = vpop.f32.mrf.mxu2  ;;  %1921 = vmatpush.msra.mxu2 %v1745_v37  ;;  %1942 = vmatpush.msrb.mxu3 %v1760_v3  ;;  %v1750_v37 = vld [vmem:[%s4365_s5 + $0x80] sm:$0xff] }
 0x257   : > { %v3708_v42 = vpop.f32.mrf.mxu1  ;;  %1922 = vmatpush.msra.mxu2 %v1744_v24  ;;  %1943 = vmatpush.msrb.mxu3 %v1759_v7  ;;  %v3844_v24 = vpop.f32.mrf.mxu3  ;;  %v1829_v7 = vld [vmem:[%s4365_s5 + $0x2f8] sm:$0xff] }
 0x259   : > { %1923 = vmatpush.msra.mxu2 %v1743_v8  ;;  %1944 = vmatpush.msrb.mxu3 %v1758_v16  ;;  %v1813_v8 = vld [vmem:[%s4365_s5 + $0x278] sm:$0xff] }
 0x25b   : > { %1924 = vmatpush.msra.mxu2 %v1742_v6  ;;  %1945 = vmatpush.msrb.mxu3 %v1757_v60 }
 0x25d   : > { %v3710_v43 = vpop.f32.mrf.mxu2  ;;  %1925 = vmatpush.msra.mxu2 %v1741_v61  ;;  %1946 = vmatpush.msrb.mxu3 %v1756_v47  ;;  %v1828_v47 = vld [vmem:[%s4365_s5 + $0x2f0] sm:$0xff] }
 0x25f   : > { %v3712_v12 = vpop.f32.mrf.mxu1  ;;  %1926 = vmatpush.msra.mxu2 %v1740_v59  ;;  %1947 = vmatpush.msrb.mxu3 %v1755_v36  ;;  %v1812_v59 = vld [vmem:[%s4365_s5 + $0x270] sm:$0xff] }
 0x261   : > { %1927 = vmatpush.msra.mxu2 %v1739_v57  ;;  %1948 = vmatpush.msrb.mxu3 %v1754_v52  ;;  %v1827_v52 = vld [vmem:[%s4365_s5 + $0x2e8] sm:$0xff] }
 0x263   : > { %1928 = vmatpush.msra.mxu2 %v1738_v25  ;;  %1949 = vmatpush.msrb.mxu3 %v1753_v14  ;;  %v1811_v25 = vld [vmem:[%s4365_s5 + $0x268] sm:$0xff] }
 0x265   : > { %v3714_v44 = vpop.f32.mrf.mxu2  ;;  %1929 = vmatpush.msra.mxu2 %v1737_v4  ;;  %1950 = vmatpush.msrb.mxu3 %v1752_v41  ;;  %v1826_v41 = vld [vmem:[%s4365_s5 + $0x2e0] sm:$0xff] }
 0x267   : > { %v3716_v39 = vpop.f32.mrf.mxu1  ;;  %1930 = vmatpush.msra.mxu2 %v1736_v51  ;;  %1951 = vmatpush.msrb.mxu3 %v1751_v31  ;;  %v1810_v51 = vld [vmem:[%s4365_s5 + $0x260] sm:$0xff]  ;;  %v1809_v31 = vld [vmem:[%s4365_s5 + $0x258] sm:$0xff] }
 0x269   : > { %1931 = vmatpush.msra.mxu2 %v1735_v55  ;;  %1952 = vmatpush.msrb.mxu3 %v1750_v37 }
 0x26b   : > { %1932 = vmatpush.msra.mxu2 %v1734_v38  ;;  %2017 = vmatpush.msra.mxu3 %v1829_v7  ;;  %v3895_v38 = vpop.f32.mrf.mxu3 }
 0x26d   : > { %v3718_v21 = vpop.f32.mrf.mxu2  ;;  %1997 = vmatpush.msrb.mxu2 %v1813_v8  ;;  %2018 = vmatpush.msra.mxu3 %v1828_v47 }
 0x26f   : > { %v3720_v10 = vpop.f32.mrf.mxu1  ;;  %1998 = vmatpush.msrb.mxu2 %v1812_v59  ;;  %2019 = vmatpush.msra.mxu3 %v1827_v52  ;;  %v1823_v59 = vld [vmem:[%s4365_s5 + $0x2c8] sm:$0xff] }
 0x271   : > { %1999 = vmatpush.msrb.mxu2 %v1811_v25  ;;  %2020 = vmatpush.msra.mxu3 %v1826_v41 }
 0x273   : > { %2000 = vmatpush.msrb.mxu2 %v1810_v51  ;;  %v1804_v51 = vld [vmem:[%s4365_s5 + $0x230] sm:$0xff] }
 0x275   : > { %v3722_v48 = vpop.f32.mrf.mxu2  ;;  %2001 = vmatpush.msrb.mxu2 %v1809_v31  ;;  %v1127_v31 = vadd.f32 %v3702_v23, %v3842_v58  ;;  %v1124_v23 = vadd.f32 %v3686_v11, %v3842_v58 }
 0x277   : > { %v3724_v32 = vpop.f32.mrf.mxu1  ;;  %v1205_v11 = vmax.f32 %v1127_v31, 0.0 }
 0x278   : > { %v1093_v16 = vadd.f32 %v3724_v32, %v3811_v27  ;;  %v1090_v32 = vadd.f32 %v3720_v10, %v3811_v27  ;;  %v1088_v10 = vadd.f32 %v3716_v39, %v3811_v27  ;;  %v1085_v39 = vadd.f32 %v3712_v12, %v3811_v27 }
 0x279   : > { %v1083_v12 = vadd.f32 %v3708_v42, %v3811_v27  ;;  %v1080_v42 = vadd.f32 %v3704_v13, %v3811_v27  ;;  %v1078_v13 = vadd.f32 %v3691_v26, %v3811_v27  ;;  %v1075_v26 = vadd.f32 %v3672_v53, %v3811_v27 }
 0x27a   : > { %v1244_v37 = vmax.f32 %v1088_v10, 0.0  ;;  %v1821_v10 = vld [vmem:[%s4365_s5 + $0x2b8] sm:$0xff]  ;;  %v1073_v53 = vadd.f32 %v3636_v2, %v3811_v27  ;;  %v1820_v2 = vld [vmem:[%s4365_s5 + $0x2b0] sm:$0xff] }
 0x27b   : > { %v1224_v47 = vmax.f32 %v1083_v12, 0.0  ;;  %v1214_v25 = vmax.f32 %v1080_v42, 0.0  ;;  %v1802_v12 = vld [vmem:[%s4365_s5 + $0x220] sm:$0xff] }
 0x27d   : > { %v3726_v5 = vpop.f32.mrf.mxu2 }
 0x27f   : > { %v3728_v0 = vpop.f32.mrf.mxu1 }
 0x280   : > { %v1095_v3 = vadd.f32 %v3728_v0, %v3811_v27 }
 0x282   : > { %v1274_v36 = vmax.f32 %v1095_v3, 0.0 }
 0x284   : > { %v1434_v55 = vmin.f32 %v1274_v36, 6.0 }
 0x285   : > { %v3736_v56 = vpop.f32.mrf.mxu2 }
 0x287   : > { %v3744_v29 = vpop.f32.mrf.mxu1 }
 0x288   : > { %v1098_v20 = vadd.f32 %v3744_v29, %v3811_v27 }
 0x28a   : > { %v1284_v61 = vmax.f32 %v1098_v20, 0.0  ;;  %v1825_v20 = vld [vmem:[%s4365_s5 + $0x2d8] sm:$0xff] }
 0x28b   : > { %2021 = vmatpush.msra.mxu3 %v1825_v20 }
 0x28d   : > { %v3764_v63 = vpop.f32.mrf.mxu2 }
 0x28f   : > { %v1099_v30 = vpop.f32.mrf.mxu1 }
 0x290   : > { %v1100_v15 = vadd.f32 %v1099_v30, %v3811_v27 }
 0x292   : > { %v1294_v29 = vmax.f32 %v1100_v15, 0.0 }
 0x294   : > { %v1454_v46 = vmin.f32 %v1294_v29, 6.0  ;;  %v1808_v29 = vld [vmem:[%s4365_s5 + $0x250] sm:$0xff] }
 0x295   : > { %v1148_v62 = vpop.f32.mrf.mxu2  ;;  %2002 = vmatpush.msrb.mxu2 %v1808_v29 }
 0x297   : > { %v1102_v54 = vpop.f32.mrf.mxu1 }
 0x298   : > { %v1103_v17 = vadd.f32 %v1102_v54, %v3811_v27  ;;  %v1149_v54 = vadd.f32 %v1148_v62, %v3842_v58  ;;  %v1147_v62 = vadd.f32 %v3764_v63, %v3842_v58  ;;  %v1144_v63 = vadd.f32 %v3736_v56, %v3842_v58 }
 0x299   : > { %v1142_v56 = vadd.f32 %v3726_v5, %v3842_v58  ;;  %v1824_v5 = vld [vmem:[%s4365_s5 + $0x2d0] sm:$0xff] }
 0x29a   : > { %v1304_v45 = vmax.f32 %v1103_v17, 0.0  ;;  %v1264_v17 = vmax.f32 %v1093_v16, 0.0  ;;  %v1275_v8 = vmax.f32 %v1144_v63, 0.0  ;;  %2022 = vmatpush.msra.mxu3 %v1824_v5  ;;  %v1801_v5 = vld [vmem:[%s4365_s5 + $0x218] sm:$0xff] }
 0x29c   : > { %v1464_v60 = vmin.f32 %v1304_v45, 6.0  ;;  %v1285_v45 = vmax.f32 %v1147_v62, 0.0  ;;  %v1424_v3 = vmin.f32 %v1264_v17, 6.0  ;;  %2023 = vmatpush.msra.mxu3 %v1823_v59  ;;  %v1435_v36 = vmin.f32 %v1275_v8, 6.0  ;;  %v1805_v62 = vld [vmem:[%s4365_s5 + $0x238] sm:$0xff]  ;;  %v1799_v59 = vld [vmem:[%s4365_s5 + $0x208] sm:$0xff] }
 0x29d   : > { %v1151_v35 = vpop.f32.mrf.mxu2  ;;  %v1204_v17 = vmax.f32 %v1078_v13, 0.0  ;;  %v1122_v8 = vadd.f32 %v3662_v49, %v3842_v58  ;;  %v1195_v49 = vmax.f32 %v1124_v23, 0.0  ;;  %v1815_v13 = vld [vmem:[%s4365_s5 + $0x288] sm:$0xff] }
 0x29e   : > { %v1152_v6 = vadd.f32 %v1151_v35, %v3842_v58  ;;  %v1444_v35 = vmin.f32 %v1284_v61, 6.0  ;;  %v1807_v61 = vld [vmem:[%s4365_s5 + $0x248] sm:$0xff] }
 0x29f   : > { %v1104_v22 = vpop.f32.mrf.mxu1  ;;  %2003 = vmatpush.msrb.mxu2 %v1807_v61  ;;  %v1816_v61 = vld [vmem:[%s4365_s5 + $0x290] sm:$0xff] }
 0x2a0   : > { %v1105_v33 = vadd.f32 %v1104_v22, %v3811_v27  ;;  %v1305_v4 = vmax.f32 %v1152_v6, 0.0  ;;  %v1295_v22 = vmax.f32 %v1149_v54, 0.0  ;;  %v1234_v6 = vmax.f32 %v1085_v39, 0.0 }
 0x2a1   : > { %v1404_v54 = vmin.f32 %v1244_v37, 6.0  ;;  %v1194_v39 = vmax.f32 %v1075_v26, 0.0  ;;  %v1818_v37 = vld [vmem:[%s4365_s5 + $0x2a0] sm:$0xff]  ;;  %v1780_v26 = vld [vmem:[%s4365_s5 + $0x170] sm:$0xff] }
 0x2a2   : > { %v1314_v1 = vmax.f32 %v1105_v33, 0.0  ;;  %v1254_v33 = vmax.f32 %v1090_v32, 0.0  ;;  %v1455_v7 = vmin.f32 %v1295_v22, 6.0  ;;  %v1394_v52 = vmin.f32 %v1234_v6, 6.0  ;;  %v3944_v22 = vpop.f32.mrf.mxu3 }
 0x2a4   : > { %v1474_v30 = vmin.f32 %v1314_v1, 6.0  ;;  %v1465_v1 = vmin.f32 %v1305_v4, 6.0  ;;  %v1414_v16 = vmin.f32 %v1254_v33, 6.0  ;;  %v1374_v33 = vmin.f32 %v1214_v25, 6.0 }
 0x2a5   : > { %v1153_v0 = vpop.f32.mrf.mxu2 }
 0x2a6   : > { %1646 = vmatpush.msra.mxu0 %v1474_v30  ;;  %v1154_v57 = vadd.f32 %v1153_v0, %v3842_v58  ;;  %v1139_v30 = vadd.f32 %v3722_v48, %v3842_v58  ;;  %v1265_v0 = vmax.f32 %v1142_v56, 0.0  ;;  %v1445_v48 = vmin.f32 %v1285_v45, 6.0 }
 0x2a7   : > { %v1184_v45 = vmax.f32 %v1073_v53, 0.0 }
 0x2a8   : > { %1647 = vmatpush.msra.mxu0 %v1464_v60  ;;  %v1315_v14 = vmax.f32 %v1154_v57, 0.0  ;;  %v1137_v60 = vadd.f32 %v3718_v21, %v3842_v58  ;;  %v1806_v57 = vld [vmem:[%s4365_s5 + $0x240] sm:$0xff]  ;;  %v1134_v21 = vadd.f32 %v3714_v44, %v3842_v58  ;;  %v1255_v32 = vmax.f32 %v1139_v30, 0.0  ;;  %v1817_v30 = vld [vmem:[%s4365_s5 + $0x298] sm:$0xff] }
 0x2a9   : > { %2004 = vmatpush.msrb.mxu2 %v1806_v57  ;;  %v1132_v44 = vadd.f32 %v3710_v43, %v3842_v58  ;;  %v1129_v43 = vadd.f32 %v3706_v9, %v3842_v58  ;;  %v1803_v9 = vld [vmem:[%s4365_s5 + $0x228] sm:$0xff]  ;;  %v1344_v6 = vmin.f32 %v1184_v45, 6.0 }
 0x2aa   : > { %1648 = vmatpush.msra.mxu0 %v1454_v46  ;;  %v1475_v15 = vmin.f32 %v1315_v14, 6.0  ;;  %v1822_v46 = vld [vmem:[%s4365_s5 + $0x2c0] sm:$0xff]  ;;  %v1245_v4 = vmax.f32 %v1137_v60, 0.0  ;;  %v1425_v14 = vmin.f32 %v1265_v0, 6.0  ;;  %v1235_v41 = vmax.f32 %v1134_v21, 0.0  ;;  %v1563_v57 = vpop.f32.mrf.mxu3 }
 0x2ab   : > { %2024 = vmatpush.msra.mxu3 %v1822_v46  ;;  %2005 = vmatpush.msrb.mxu2 %v1805_v62  ;;  %v1415_v63 = vmin.f32 %v1255_v32, 6.0  ;;  %v1225_v20 = vmax.f32 %v1132_v44, 0.0  ;;  %v1119_v60 = vadd.f32 %v3626_v18, %v3842_v58  ;;  %v1365_v18 = vmin.f32 %v1205_v11, 6.0  ;;  %v1781_v32 = vld [vmem:[%s4365_s5 + $0x178] sm:$0xff]  ;;  %v1779_v62 = vld [vmem:[%s4365_s5 + $0x168] sm:$0xff] }
 0x2ac   : > { %1649 = vmatpush.msra.mxu0 %v1444_v35  ;;  %1666 = vmatpush.msra.mxu1 %v1475_v15  ;;  %v1384_v35 = vmin.f32 %v1224_v47, 6.0  ;;  %v1070_v15 = vadd.f32 %v3600_v34, %v3811_v27  ;;  %v1405_v56 = vmin.f32 %v1245_v4, 6.0  ;;  %v1068_v34 = vadd.f32 %v3576_v50, %v3811_v27  ;;  %v1778_v4 = vld [vmem:[%s4365_s5 + $0x160] sm:$0xff] }
 0x2ad   : > { %2025 = vmatpush.msra.mxu3 %v1821_v10  ;;  %2006 = vmatpush.msrb.mxu2 %v1804_v51  ;;  %v1395_v29 = vmin.f32 %v1235_v41, 6.0  ;;  %v1354_v27 = vmin.f32 %v1194_v39, 6.0  ;;  %v1117_v47 = vadd.f32 %v3590_v19, %v3842_v58  ;;  %v1814_v19 = vld [vmem:[%s4365_s5 + $0x280] sm:$0xff]  ;;  %v1175_v58 = vmax.f32 %v1119_v60, 0.0  ;;  %v1777_v41 = vld [vmem:[%s4365_s5 + $0x158] sm:$0xff]  ;;  %v1787_v60 = vld [vmem:[%s4365_s5 + $0x1a8] sm:$0xff] }
 0x2ae   : > { %1650 = vmatpush.msra.mxu0 %v1434_v55  ;;  %1667 = vmatpush.msra.mxu1 %v1465_v1  ;;  %v1819_v55 = vld [vmem:[%s4365_s5 + $0x2a8] sm:$0xff]  ;;  %v1364_v1 = vmin.f32 %v1204_v17, 6.0  ;;  %v1174_v50 = vmax.f32 %v1070_v15, 0.0  ;;  %v1164_v42 = vmax.f32 %v1068_v34, 0.0  ;;  %v1355_v46 = vmin.f32 %v1195_v49, 6.0  ;;  %v1776_v15 = vld [vmem:[%s4365_s5 + $0x150] sm:$0xff] }
 0x2af   : > { %2026 = vmatpush.msra.mxu3 %v1820_v2  ;;  %2007 = vmatpush.msrb.mxu2 %v1803_v9  ;;  %v1165_v25 = vmax.f32 %v1117_v47, 0.0  ;;  %v1335_v44 = vmin.f32 %v1175_v58, 6.0  ;;  %v1696_v17 = vrot.slane %v3895_v38, 7  ;;  %v1698_v51 = vrot.slane %v1563_v57, 5  ;;  %v1796_v38 = vld [vmem:[%s4365_s5 + $0x1f0] sm:$0xff]  ;;  %v1767_v49 = vld [vmem:[%s4365_s5 + $0x108] sm:$0xff] }
 0x2b0   : > { %1651 = vmatpush.msra.mxu0 %v1424_v3  ;;  %1668 = vmatpush.msra.mxu1 %v1455_v7  ;;  %v1215_v3 = vmax.f32 %v1129_v43, 0.0  ;;  %v1385_v7 = vmin.f32 %v1225_v20, 6.0  ;;  %v1324_v21 = vmin.f32 %v1164_v42, 6.0  ;;  %v1797_v43 = vld [vmem:[%s4365_s5 + $0x1f8] sm:$0xff]  ;;  %v1844_v57 = vld [vmem:[%s4365_s5 + $0x370] sm:$0xff]  ;;  %v1842_v58 = vld [vmem:[%s4365_s5 + $0x360] sm:$0xff] }
 0x2b1   : > { %2027 = vmatpush.msra.mxu3 %v1819_v55  ;;  %2008 = vmatpush.msrb.mxu2 %v1802_v12  ;;  %v1704_v39 = vsel %vm401_vm0, %v3844_v24, %v1696_v17  ;;  %v1794_v24 = vld [vmem:[%s4365_s5 + $0x1e0] sm:$0xff]  ;;  %v1773_v12 = vld [vmem:[%s4365_s5 + $0x138] sm:$0xff]  ;;  %v1839_v17 = vld [vmem:[%s4365_s5 + $0x348] sm:$0xff] }
 0x2b2   : > { %1652 = vmatpush.msra.mxu0 %v1414_v16  ;;  %1669 = vmatpush.msra.mxu1 %v1445_v48  ;;  %v1800_v16 = vld [vmem:[%s4365_s5 + $0x210] sm:$0xff]  ;;  %v1375_v0 = vmin.f32 %v1215_v3, 6.0  ;;  %v1334_v48 = vmin.f32 %v1174_v50, 6.0  ;;  %v1791_v50 = vld [vmem:[%s4365_s5 + $0x1c8] sm:$0xff]  ;;  %v1789_v42 = vld [vmem:[%s4365_s5 + $0x1b8] sm:$0xff] }
 0x2b3   : > { %2028 = vmatpush.msra.mxu3 %v1818_v37  ;;  %2009 = vmatpush.msrb.mxu2 %v1801_v5  ;;  %v1792_v3 = vld [vmem:[%s4365_s5 + $0x1d0] sm:$0xff]  ;;  %v1845_v47 = vld [vmem:[%s4365_s5 + $0x378] sm:$0xff] }
 0x2b4   : > { %1653 = vmatpush.msra.mxu0 %v1404_v54  ;;  %1670 = vmatpush.msra.mxu1 %v1435_v36  ;;  %v1185_v54 = vmax.f32 %v1122_v8, 0.0  ;;  %v1798_v36 = vld [vmem:[%s4365_s5 + $0x200] sm:$0xff] }
 0x2b5   : > { %2029 = vmatpush.msra.mxu3 %v1817_v30  ;;  %2010 = vmatpush.msrb.mxu2 %v1800_v16  ;;  %v1790_v30 = vld [vmem:[%s4365_s5 + $0x1c0] sm:$0xff]  ;;  %v1788_v16 = vld [vmem:[%s4365_s5 + $0x1b0] sm:$0xff] }
 0x2b6   : > { %1654 = vmatpush.msra.mxu0 %v1394_v52  ;;  %1671 = vmatpush.msra.mxu1 %v1425_v14  ;;  %v1345_v52 = vmin.f32 %v1185_v54, 6.0  ;;  %v1325_v14 = vmin.f32 %v1165_v25, 6.0  ;;  %v1770_v8 = vld [vmem:[%s4365_s5 + $0x120] sm:$0xff]  ;;  %v1841_v25 = vld [vmem:[%s4365_s5 + $0x358] sm:$0xff] }
 0x2b7   : > { %2030 = vmatpush.msra.mxu3 %v1816_v61  ;;  %2011 = vmatpush.msrb.mxu2 %v1799_v59  ;;  %v1768_v61 = vld [vmem:[%s4365_s5 + $0x110] sm:$0xff]  ;;  %v1785_v59 = vld [vmem:[%s4365_s5 + $0x198] sm:$0xff] }
 0x2b8   : > { %1655 = vmatpush.msra.mxu0 %v1384_v35  ;;  %1672 = vmatpush.msra.mxu1 %v1415_v63  ;;  %v1697_v35 = vrot.slane %v3944_v22, 6 }
 0x2b9   : > { %2031 = vmatpush.msra.mxu3 %v1815_v13  ;;  %2012 = vmatpush.msrb.mxu2 %v1798_v36  ;;  %v1843_v36 = vld [vmem:[%s4365_s5 + $0x368] sm:$0xff] }
 0x2ba   : > { %1656 = vmatpush.msra.mxu0 %v1374_v33  ;;  %1673 = vmatpush.msra.mxu1 %v1405_v56  ;;  %v1706_v33 = vsel %vm1705_vm5, %v1697_v35, %v1698_v51  ;;  %v1774_v56 = vld [vmem:[%s4365_s5 + $0x140] sm:$0xff]  ;;  %v1875_v35 = vld [vmem:[%s4365_s5 + $0x468] sm:$0xff] }
 0x2bb   : > { %2032 = vmatpush.msra.mxu3 %v1814_v19  ;;  %v1707_v34 = vsel %vm402_vm1, %v1704_v39, %v1706_v33  ;;  %v1782_v19 = vld [vmem:[%s4365_s5 + $0x180] sm:$0xff]  ;;  %v1891_v51 = vld [vmem:[%s4365_s5 + $0x4e8] sm:$0xff]  ;;  %v1889_v39 = vld [vmem:[%s4365_s5 + $0x4d8] sm:$0xff] }
 0x2bc   : > { %1657 = vmatpush.msra.mxu0 %v1364_v1  ;;  %1674 = vmatpush.msra.mxu1 %v1395_v29  ;;  %v1793_v1 = vld [vmem:[%s4365_s5 + $0x1d8] sm:$0xff]  ;;  %v1772_v29 = vld [vmem:[%s4365_s5 + $0x130] sm:$0xff] }
 0x2bd   : > { %v1856_v33 = vld [vmem:[%s4365_s5 + $0x3d0] sm:$0xff] }
 0x2be   : > { %1658 = vmatpush.msra.mxu0 %v1354_v27  ;;  %1675 = vmatpush.msra.mxu1 %v1385_v7  ;;  %v1771_v27 = vld [vmem:[%s4365_s5 + $0x128] sm:$0xff] }
 0x2c0   : > { %1659 = vmatpush.msra.mxu0 %v1344_v6  ;;  %1676 = vmatpush.msra.mxu1 %v1375_v0  ;;  %v1769_v6 = vld [vmem:[%s4365_s5 + $0x118] sm:$0xff]  ;;  %v1786_v0 = vld [vmem:[%s4365_s5 + $0x1a0] sm:$0xff] }
 0x2c2   : > { %1660 = vmatpush.msra.mxu0 %v1334_v48  ;;  %1677 = vmatpush.msra.mxu1 %v1365_v18  ;;  %v1766_v48 = vld [vmem:[%s4365_s5 + $0x100] sm:$0xff]  ;;  %v1784_v18 = vld [vmem:[%s4365_s5 + $0x190] sm:$0xff] }
 0x2c4   : > { %1661 = vmatpush.msra.mxu0 %v1324_v21  ;;  %1678 = vmatpush.msra.mxu1 %v1355_v46 }
 0x2c5   : > { %2428 = vmatmul.msk.f32.vlgmr.msra.gmra.mxu0 %vm1481_vm4, %v4427_v40  ;;  %v1583_v10 = vpop.f32.mrf.mxu0 }
 0x2c6   : > { %1957 = vmatpush.msrb.mxu0 %v1781_v32  ;;  %1679 = vmatpush.msra.mxu1 %v1345_v52  ;;  %v1699_v22 = vrot.slane %v1583_v10, 4  ;;  %v1783_v32 = vld [vmem:[%s4365_s5 + $0x188] sm:$0xff]  ;;  %v1860_v52 = vld [vmem:[%s4365_s5 + $0x3f0] sm:$0xff] }
 0x2c7   : > { %v1892_v10 = vld [vmem:[%s4365_s5 + $0x4f0] sm:$0xff] }
 0x2c8   : > { %1958 = vmatpush.msrb.mxu0 %v1780_v26  ;;  %1680 = vmatpush.msra.mxu1 %v1335_v44  ;;  %v1861_v26 = vld [vmem:[%s4365_s5 + $0x3f8] sm:$0xff] }
 0x2c9   : > { %v1603_v53 = vpop.f32.mrf.mxu1  ;;  %v1877_v44 = vld [vmem:[%s4365_s5 + $0x478] sm:$0xff] }
 0x2ca   : > { %1959 = vmatpush.msrb.mxu0 %v1779_v62  ;;  %1681 = vmatpush.msra.mxu1 %v1325_v14  ;;  %v1700_v2 = vrot.slane %v1603_v53, 3  ;;  %v1840_v62 = vld [vmem:[%s4365_s5 + $0x350] sm:$0xff]  ;;  %v1859_v53 = vld [vmem:[%s4365_s5 + $0x3e8] sm:$0xff] }
 0x2cb   : > { %v1643_v63 = vpop.f32.mrf.mxu3  ;;  %2429 = vmatmul.msk.f32.vlgmr.msra.gmra.mxu1 %vm1481_vm4, %v4427_v40  ;;  %v1775_v40 = vld [vmem:[%s4365_s5 + $0x148] sm:$0xff]  ;;  %v1876_v14 = vld [vmem:[%s4365_s5 + $0x470] sm:$0xff] }
 0x2cc   : > { %1960 = vmatpush.msrb.mxu0 %v1778_v4  ;;  %1977 = vmatpush.msrb.mxu1 %v1797_v43  ;;  %v1702_v9 = vrot.slane %v1643_v63, 1  ;;  %v1709_v31 = vsel %vm1708_vm6, %v1699_v22, %v1700_v2  ;;  %v1893_v4 = vld [vmem:[%s4365_s5 + $0x4f8] sm:$0xff]  ;;  %v1858_v43 = vld [vmem:[%s4365_s5 + $0x3e0] sm:$0xff] }
 0x2cd   : > { %v1874_v63 = vld [vmem:[%s4365_s5 + $0x460] sm:$0xff]  ;;  %v1857_v22 = vld [vmem:[%s4365_s5 + $0x3d8] sm:$0xff] }
 0x2ce   : > { %1961 = vmatpush.msrb.mxu0 %v1777_v41  ;;  %1978 = vmatpush.msrb.mxu1 %v1796_v38  ;;  %v1838_v41 = vld [vmem:[%s4365_s5 + $0x340] sm:$0xff]  ;;  %v1837_v2 = vld [vmem:[%s4365_s5 + $0x338] sm:$0xff] }
 0x2cf   : > { %v1623_v55 = vpop.f32.mrf.mxu2  ;;  %v1890_v38 = vld [vmem:[%s4365_s5 + $0x4e0] sm:$0xff] }
 0x2d0   : > { %1962 = vmatpush.msrb.mxu0 %v1776_v15  ;;  %v1701_v20 = vrot.slane %v1623_v55, 2  ;;  %1979 = vmatpush.msrb.mxu1 %v1795_v28  ;;  %v1873_v15 = vld [vmem:[%s4365_s5 + $0x458] sm:$0xff]  ;;  %v1872_v28 = vld [vmem:[%s4365_s5 + $0x450] sm:$0xff]  ;;  %v1855_v55 = vld [vmem:[%s4365_s5 + $0x3c8] sm:$0xff] }
 0x2d2   : > { %1963 = vmatpush.msrb.mxu0 %v1775_v40  ;;  %v1711_v45 = vsel %vm1710_vm7, %v1701_v20, %v1702_v9  ;;  %1980 = vmatpush.msrb.mxu1 %v1794_v24  ;;  %v1836_v9 = vld [vmem:[%s4365_s5 + $0x330] sm:$0xff]  ;;  %v1871_v20 = vld [vmem:[%s4365_s5 + $0x448] sm:$0xff]  ;;  %v1854_v24 = vld [vmem:[%s4365_s5 + $0x3c0] sm:$0xff] }
 0x2d3   : > { %v1713_v37 = vsel %vm1712_vm8, %v1709_v31, %v1711_v45  ;;  %v1888_v40 = vld [vmem:[%s4365_s5 + $0x4d0] sm:$0xff]  ;;  %v1835_v31 = vld [vmem:[%s4365_s5 + $0x328] sm:$0xff]  ;;  %v1833_v45 = vld [vmem:[%s4365_s5 + $0x318] sm:$0xff] }
 0x2d4   : > { %1964 = vmatpush.msrb.mxu0 %v1774_v56  ;;  %v1715_v23 = vsel %vm1714_vm9, %v1707_v34, %v1713_v37  ;;  %1981 = vmatpush.msrb.mxu1 %v1793_v1  ;;  %v1834_v56 = vld [vmem:[%s4365_s5 + $0x320] sm:$0xff]  ;;  %v1853_v34 = vld [vmem:[%s4365_s5 + $0x3b8] sm:$0xff]  ;;  %v1852_v1 = vld [vmem:[%s4365_s5 + $0x3b0] sm:$0xff] }
 0x2d5   : > { %v4064_v5 = vmul.f32 0.03125, %v1715_v23  ;;  %v1851_v37 = vld [vmem:[%s4365_s5 + $0x3a8] sm:$0xff] }
 0x2d6   : > { %1965 = vmatpush.msrb.mxu0 %v1773_v12  ;;  %1982 = vmatpush.msrb.mxu1 %v1792_v3  ;;  %v1832_v12 = vld [vmem:[%s4365_s5 + $0x310] sm:$0xff]  ;;  %v1831_v23 = vld [vmem:[%s4365_s5 + $0x308] sm:$0xff]  ;;  %v1850_v3 = vld [vmem:[%s4365_s5 + $0x3a0] sm:$0xff] }
 0x2d7   : > { %v1897_v11 = vperm.slane %v4064_v5, 0  ;;  %v1898_v7 = vperm.slane %v4064_v5, 1  ;;  %v1899_v13 = vperm.slane %v4064_v5, 2  ;;  %v1901_v54 = vperm.slane %v4064_v5, 4 }
 0x2d8   : > { %1966 = vmatpush.msrb.mxu0 %v1772_v29  ;;  %1983 = vmatpush.msrb.mxu1 %v1791_v50  ;;  %v1902_v21 = vperm.slane %v4064_v5, 5  ;;  %v1900_v46 = vperm.slane %v4064_v5, 3  ;;  %v1830_v29 = vld [vmem:[%s4365_s5 + $0x300] sm:$0xff]  ;;  %v1849_v50 = vld [vmem:[%s4365_s5 + $0x398] sm:$0xff] }
 0x2d9   : > { %1933 = vmatmul.f32.vlgmr.msra.gmra.mxu2 %v1897_v11  ;;  %1953 = vmatmul.f32.vlgmr.msrb.gmra.mxu3 %v1898_v7  ;;  %v1846_v11 = vld [vmem:[%s4365_s5 + $0x380] sm:$0xff]  ;;  %v1904_v7 = vperm.slane %v4064_v5, 7 }
 0x2da   : > { %1967 = vmatpush.msrb.mxu0 %v1771_v27  ;;  %1984 = vmatpush.msrb.mxu1 %v1790_v30  ;;  %v1903_v27 = vperm.slane %v4064_v5, 6  ;;  %v1848_v30 = vld [vmem:[%s4365_s5 + $0x390] sm:$0xff]  ;;  %v1886_v5 = vld [vmem:[%s4365_s5 + $0x4c0] sm:$0xff] }
 0x2db   : > { %2077 = vmatpush.msra.mxu2 %v1877_v44  ;;  %2097 = vmatpush.msrb.mxu3 %v1893_v4 }
 0x2dc   : > { %1968 = vmatpush.msrb.mxu0 %v1770_v8  ;;  %1985 = vmatpush.msrb.mxu1 %v1789_v42  ;;  %v1847_v8 = vld [vmem:[%s4365_s5 + $0x388] sm:$0xff]  ;;  %v4479_v42 = vlaneseq }
 0x2dd   : > { %2078 = vmatpush.msra.mxu2 %v1876_v14  ;;  %2098 = vmatpush.msrb.mxu3 %v1892_v10 }
 0x2de   : > { %1969 = vmatpush.msrb.mxu0 %v1769_v6  ;;  %1986 = vmatpush.msrb.mxu1 %v1788_v16  ;;  %vm4252_vm10 = vcmp.lt.s32.totalorder %v4479_v42, 256  ;;  %v2606_v16 = vmov 0.0  }
 0x2df   : > { %2079 = vmatpush.msra.mxu2 %v1875_v35  ;;  %2099 = vmatpush.msrb.mxu3 %v1891_v51  ;;  %314 = vst.msk [vmem:[#allocation2 + $0x8] sm:$0x3] %vm4252_vm10, %v2606_v16  ;;  %v1894_v51 = vld [vmem:[%s4366_s6] sm:$0x1] }
 0x2e0   : > { %1970 = vmatpush.msrb.mxu0 %v1768_v61  ;;  %1987 = vmatpush.msrb.mxu1 %v1787_v60  ;;  %v1870_v61 = vld [vmem:[%s4365_s5 + $0x440] sm:$0xff]  ;;  %v1887_v60 = vld [vmem:[%s4365_s5 + $0x4c8] sm:$0xff] }
 0x2e1   : > { %2013 = vmatmul.f32.vlgmr.msrb.gmra.mxu2 %v1901_v54  ;;  %2033 = vmatmul.f32.vlgmr.msra.gmra.mxu3 %v1902_v21  ;;  %v1866_v54 = vld [vmem:[%s4365_s5 + $0x420] sm:$0xff]  ;;  %v1881_v21 = vld [vmem:[%s4365_s5 + $0x498] sm:$0xff] }
 0x2e2   : > { %1971 = vmatpush.msrb.mxu0 %v1767_v49  ;;  %1988 = vmatpush.msrb.mxu1 %v1786_v0  ;;  %v1869_v49 = vld [vmem:[%s4365_s5 + $0x438] sm:$0xff] }
 0x2e3   : > { %2080 = vmatpush.msra.mxu2 %v1874_v63  ;;  %2100 = vmatpush.msrb.mxu3 %v1890_v38  ;;  %v1885_v0 = vld [vmem:[%s4365_s5 + $0x4b8] sm:$0xff] }
 0x2e4   : > { %1972 = vmatpush.msrb.mxu0 %v1766_v48  ;;  %1989 = vmatpush.msrb.mxu1 %v1785_v59  ;;  %v1868_v48 = vld [vmem:[%s4365_s5 + $0x430] sm:$0xff]  ;;  %v1867_v59 = vld [vmem:[%s4365_s5 + $0x428] sm:$0xff] }
 0x2e5   : > { %1973 = vmatmul.f32.vlgmr.msrb.gmra.mxu0 %v1899_v13  ;;  %2081 = vmatpush.msra.mxu2 %v1873_v15  ;;  %v1884_v13 = vld [vmem:[%s4365_s5 + $0x4b0] sm:$0xff] }
 0x2e6   : > { %2037 = vmatpush.msra.mxu0 %v1845_v47  ;;  %1990 = vmatpush.msrb.mxu1 %v1784_v18  ;;  %v1883_v47 = vld [vmem:[%s4365_s5 + $0x4a8] sm:$0xff]  ;;  %v1882_v18 = vld [vmem:[%s4365_s5 + $0x4a0] sm:$0xff] }
 0x2e7   : > { %2101 = vmatpush.msrb.mxu3 %v1889_v39  ;;  %2082 = vmatpush.msra.mxu2 %v1872_v28  ;;  %v1485_v44 = vld [vmem:[#allocation2 + $0x8] sm:$0x3] }
 0x2e8   : > { %2038 = vmatpush.msra.mxu0 %v1844_v57  ;;  %1991 = vmatpush.msrb.mxu1 %v1783_v32  ;;  %v1865_v57 = vld [vmem:[%s4365_s5 + $0x418] sm:$0xff]  ;;  %v1864_v32 = vld [vmem:[%s4365_s5 + $0x410] sm:$0xff] }
 0x2e9   : > { %2102 = vmatpush.msrb.mxu3 %v1888_v40  ;;  %2083 = vmatpush.msra.mxu2 %v1871_v20 }
 0x2ea   : > { %2039 = vmatpush.msra.mxu0 %v1843_v36  ;;  %1992 = vmatpush.msrb.mxu1 %v1782_v19  ;;  %v1880_v36 = vld [vmem:[%s4365_s5 + $0x490] sm:$0xff]  ;;  %v1863_v19 = vld [vmem:[%s4365_s5 + $0x408] sm:$0xff] }
 0x2eb   : > { %1993 = vmatmul.f32.vlgmr.msrb.gmra.mxu1 %v1900_v46  ;;  %2084 = vmatpush.msra.mxu2 %v1870_v61  ;;  %v1862_v46 = vld [vmem:[%s4365_s5 + $0x400] sm:$0xff] }
 0x2ec   : > { %2040 = vmatpush.msra.mxu0 %v1842_v58  ;;  %2057 = vmatpush.msra.mxu1 %v1861_v26  ;;  %v1879_v58 = vld [vmem:[%s4365_s5 + $0x488] sm:$0xff]  ;;  %v1878_v26 = vld [vmem:[%s4365_s5 + $0x480] sm:$0xff] }
 0x2ed   : > { %2103 = vmatpush.msrb.mxu3 %v1887_v60  ;;  %2085 = vmatpush.msra.mxu2 %v1869_v49 }
 0x2ee   : > { %2041 = vmatpush.msra.mxu0 %v1841_v25  ;;  %2058 = vmatpush.msra.mxu1 %v1860_v52 }
 0x2ef   : > { %2104 = vmatpush.msrb.mxu3 %v1886_v5  ;;  %2086 = vmatpush.msra.mxu2 %v1868_v48 }
 0x2f0   : > { %2042 = vmatpush.msra.mxu0 %v1840_v62  ;;  %2059 = vmatpush.msra.mxu1 %v1859_v53 }
 0x2f1   : > { %2105 = vmatpush.msrb.mxu3 %v1885_v0  ;;  %2087 = vmatpush.msra.mxu2 %v1867_v59 }
 0x2f2   : > { %2043 = vmatpush.msra.mxu0 %v1839_v17  ;;  %2060 = vmatpush.msra.mxu1 %v1858_v43 }
 0x2f3   : > { %2106 = vmatpush.msrb.mxu3 %v1884_v13  ;;  %2088 = vmatpush.msra.mxu2 %v1866_v54 }
 0x2f4   : > { %2044 = vmatpush.msra.mxu0 %v1838_v41  ;;  %2061 = vmatpush.msra.mxu1 %v1857_v22 }
 0x2f5   : > { %2107 = vmatpush.msrb.mxu3 %v1883_v47  ;;  %2089 = vmatpush.msra.mxu2 %v1865_v57 }
 0x2f6   : > { %2045 = vmatpush.msra.mxu0 %v1837_v2  ;;  %2062 = vmatpush.msra.mxu1 %v1856_v33 }
 0x2f7   : > { %2108 = vmatpush.msrb.mxu3 %v1882_v18  ;;  %2090 = vmatpush.msra.mxu2 %v1864_v32 }
 0x2f8   : > { %2046 = vmatpush.msra.mxu0 %v1836_v9  ;;  %2063 = vmatpush.msra.mxu1 %v1855_v55 }
 0x2f9   : > { %2109 = vmatpush.msrb.mxu3 %v1881_v21  ;;  %2091 = vmatpush.msra.mxu2 %v1863_v19 }
 0x2fa   : > { %2047 = vmatpush.msra.mxu0 %v1835_v31  ;;  %2064 = vmatpush.msra.mxu1 %v1854_v24 }
 0x2fb   : > { %2110 = vmatpush.msrb.mxu3 %v1880_v36  ;;  %2092 = vmatpush.msra.mxu2 %v1862_v46 }
 0x2fc   : > { %2048 = vmatpush.msra.mxu0 %v1834_v56  ;;  %2065 = vmatpush.msra.mxu1 %v1853_v34 }
 0x2fd   : > { %2111 = vmatpush.msrb.mxu3 %v1879_v58 }
 0x2fe   : > { %2049 = vmatpush.msra.mxu0 %v1833_v45  ;;  %2066 = vmatpush.msra.mxu1 %v1852_v1 }
 0x2ff   : > { %2112 = vmatpush.msrb.mxu3 %v1878_v26 }
 0x300   : > { %2050 = vmatpush.msra.mxu0 %v1832_v12  ;;  %2067 = vmatpush.msra.mxu1 %v1851_v37 }
 0x302   : > { %2051 = vmatpush.msra.mxu0 %v1831_v23  ;;  %2068 = vmatpush.msra.mxu1 %v1850_v3 }
 0x304   : > { %2052 = vmatpush.msra.mxu0 %v1830_v29  ;;  %2069 = vmatpush.msra.mxu1 %v1849_v50 }
 0x305   : > { %2053 = vmatmul.f32.vlgmr.msra.gmra.mxu0 %v1903_v27 }
 0x306   : > { %2070 = vmatpush.msra.mxu1 %v1848_v30 }
 0x308   : > { %2071 = vmatpush.msra.mxu1 %v1847_v8 }
 0x30a   : > { %2072 = vmatpush.msra.mxu1 %v1846_v11 }
 0x30b   : > { %2073 = vmatmul.f32.vlgmr.msra.gmra.mxu1 %v1904_v7 }
 0x342   : > { %v1663_v52 = vpop.f32.mrf.mxu0 }
 0x348   : > { %v1683_v25 = vpop.f32.mrf.mxu1 }
 0x349   : > { %v1703_v62 = vrot.slane %v1683_v25, 7 }
 0x34b   : > { %v1716_v4 = vsel %vm401_vm0, %v1663_v52, %v1703_v62 }
 0x34c   : > { %v1720_v14 = vadd.f32 %v1716_v4, %v1485_v44 }
 0x34e   : > { %1726 = vst.msk [vmem:[#allocation2 + $0x8] sm:$0x3] %vm4252_vm10, %v1720_v14 }
 0x355   : > { %v1731_v10 = vld [vmem:[#allocation2 + $0x8] sm:$0x3] }
 0x356   : > { %v1733_v53 = vmul.f32 0.03125, %v1731_v10 }
 0x358   : > { %v1905_v17 = vperm.slane %v1733_v53, 0  ;;  %v1906_v35 = vperm.slane %v1733_v53, 1 }
 0x35a   : > { %2093 = vmatmul.f32.vlgmr.msra.gmra.mxu2 %v1905_v17  ;;  %2113 = vmatmul.f32.vlgmr.msrb.gmra.mxu3 %v1906_v35 }
 0x35c   : > { %v1934_v43 = vpop.f32.mrf.mxu2  ;;  %v1954_v63 = vpop.f32.mrf.mxu3 }
 0x35d   : > { %v1935_v41 = vadd.f32 %v1934_v43, %v1894_v51 }
 0x35f   : > { %v1955_v38 = vadd.f32 %v1954_v63, %v1935_v41 }
 0x362   : > { %v1974_v22 = vpop.f32.mrf.mxu0 }
 0x363   : > { %v1975_v15 = vadd.f32 %v1974_v22, %v1955_v38 }
 0x364   : > { %v2014_v33 = vpop.f32.mrf.mxu2  ;;  %v2034_v28 = vpop.f32.mrf.mxu3 }
 0x368   : > { %v1994_v2 = vpop.f32.mrf.mxu1 }
 0x369   : > { %v1995_v39 = vadd.f32 %v1994_v2, %v1975_v15 }
 0x36b   : > { %v2015_v9 = vadd.f32 %v2014_v33, %v1995_v39 }
 0x36d   : > { %v2035_v55 = vadd.f32 %v2034_v28, %v2015_v9 }
 0x382   : > { %v2054_v40 = vpop.f32.mrf.mxu0 }
 0x383   : > { %v2055_v20 = vadd.f32 %v2054_v40, %v2035_v55 }
 0x388   : > { %v2074_v31 = vpop.f32.mrf.mxu1 }
 0x389   : > { %v2075_v24 = vadd.f32 %v2074_v31, %v2055_v20 }
 0x3dd   : > { %v2094_v56 = vpop.f32.mrf.mxu2  ;;  %v2114_v45 = vpop.f32.mrf.mxu3 }
 0x3de   : > { %v2095_v34 = vadd.f32 %v2094_v56, %v2075_v24 }
 0x3e0   : > { %v2115_v1 = vadd.f32 %v2114_v45, %v2095_v34 }
 0x3e2   : > { %v2117_v12 = vsel %vm401_vm0, %v2115_v1, -inf }
 0x3e3   : > { %2118 = vmax.xlane.f32.xlu0 %v2117_v12 }
 0x456   : > { %v2119_v37 = vpop.xlane.xlu0 %2118 }
 0x457   : > { %v2120_v23 = vsub.f32 %v2115_v1, %v2119_v37 }
 0x459   : > { %v2121_v3 = vmul.f32 1.442695, %v2120_v23 }
 0x45b   : > { %2520 = vpow2.f32 %v2121_v3 }
 0x461   : > { %v2521_v29 = vpop.eup %2520 }
 0x462   : > { %v2123_v50 = vsel %vm401_vm0, %v2521_v29, 0.0 }
 0x463   : > { %2124 = vadd.xlane.f32.xlu0 %v2123_v50 }
 0x4d6   : > { %v2125_v27 = vpop.xlane.xlu0 %2124 }
 0x4d7   : > { %2522 = vlog2.f32 %v2125_v27 }
 0x4dd   : > { %v2523_v30 = vpop.eup %2522 }
 0x4de   : > { %v2127_v8 = vmul.f32 0.6931472, %v2523_v30 }
 0x4e0   : > { %v2128_v11 = vsub.f32 %v2120_v23, %v2127_v8 }
 0x4e2   : > { %2129 = vst [vmem:[%s293_s20] sm:$0x1] %v2128_v11 }
 0x4e3   : > { %2551 = shalt.err (!%p2548_p5)
}
 0x4e4   : > { %2461 = dma.vmem_to_hbm [thread:$0]  (%p2687_p4), %s2142_s22, 16, %s2144_s23, %s2131_s21  }
 0x4e5 PF: > { %p2467_p6 = scmp.ge.s32.totalorder %s2602_s29, 2  ;;  %s2155_s16 = sand.u32 1, %s2582_s24  }
 0x4e6   : > { %s2156_s18 = scalar_lea.sflag [#allocation4], %s2155_s16 }
 0x4e7   : > { %p2464_p7 = pnand %p2467_p6, %p2694_p8 }
 0x4e9   : > { %p2465_p9 = pneg %p2464_p7 }
 0x4eb   : > { %2577 = dma.done.wait (%p2465_p9), %s2156_s18, 16  }
 0x4ec   : > { %2579 = vsyncadd (%p2465_p9), %s2156_s18, 4294967280  ;;  %s20_s29 = sadd.s32 1, %s2602_s29   ;;  %s4482_s24 = smov %s2586_s25 }
 0x4ed   : > { %p17_p10 = scmp.ge.s32.totalorder %s20_s29, 4   ;;  %s4483_s25 = smov %s2590_s26 }
 0x4ee   : > { %s4484_s26 = smov %s2700_s14  ;;  %s4485_s27 = smov %s2598_s28 }
 0x4ef   : > { %s4486_s28 = smov %s4488_s9  ;;  %19 = sbr.rel (!%p17_p10) target bundleno = 4 (0x4), region = 91 }
 0x4f4   :  { %2161 = vsyncpa [#allocation4], 1 }
 0x4f5   :  { %2163 = vsyncpa [#allocation4 + $0x1], 1 }

</bundles_post_ra>
